<compile_context>
chip_gen: v6e
topology: v6e:2x2x1
jax: 0.10.0
libtpu: 0.0.40
codegen_flags: <defaults>
</compile_context>

<pallas_src>
import functools
import math

import jax
import jax.numpy as jnp
from jax import lax
from jax.experimental import pallas as pl
from jax.experimental.pallas import tpu as pltpu


def _default_vmem_limit():
    """~75% of per-core VMEM, capped at 96 MiB (v5e/v6e: 96 MiB, v7x: 48 MiB)."""
    cap = 64 * 1024 * 1024
    try:
        info = pltpu.get_tpu_info()
        cap = int(getattr(info, "vmem_capacity_bytes", cap) or cap)
    except Exception:
        pass
    return min((cap * 3) // 4, 96 * 1024 * 1024)


# ----------------------------------------------------------------------------
# Kernel: one (direction, time-chunk) grid step of a bidirectional LSTM layer.
#
# Grid = (2 directions [parallel], n_chunks [arbitrary]); the backward
# direction walks the chunks (and the steps inside a chunk) in reverse order.
#
# Refs (after squeezing the per-direction leading dim):
#   len_ref : (B, 1)            int32 sequence lengths
#   x_ref   : (Tc*B, Din)       bf16 input chunk, rows ordered (t_local, b)
#   wih_ref : (Din, 4H)         bf16 transposed weight_ih, gate cols [i,f,o,g]
#   whh_ref : (H, 4H)           bf16 transposed weight_hh, gate cols [i,f,o,g]
#   b_ref   : (1, 4H)           f32  b_ih + b_hh, gate cols [i,f,o,g]
#   out_ref : (Tc, B, H)        masked hidden states of this chunk
# Scratch (persistent across the chunk axis, re-initialised at chunk step 0):
#   h_scr/c_scr : (B, H) f32    recurrent state
#   gx_scr      : (Tc*B, 4H)    precomputed x-projection (+bias) for the chunk
# ----------------------------------------------------------------------------
def bilstm_kernel(len_ref, x_ref, wih_ref, whh_ref, b_ref, out_ref,
                  h_scr, c_scr, gx_scr, *, hidden, t_chunk, batch):
    H = hidden
    d = pl.program_id(0)                  # 0 = forward, 1 = backward
    i = pl.program_id(1)                  # chunk step (iteration order)
    n_chunks = pl.num_programs(1)
    # Actual chunk index (backward walks chunks in reverse; matches index_maps).
    chunk = d * (n_chunks - 1) + (1 - 2 * d) * i
    base_t = chunk * t_chunk

    @pl.when(i == 0)
    def _():                               # fresh state per direction
        h_scr[...] = jnp.zeros_like(h_scr)
        c_scr[...] = jnp.zeros_like(c_scr)

    # ---- Hoisted input projection: ONE GEMM per (direction, chunk). --------
    # bf16 operands, f32 accumulation, bias folded in, ONE lane/sublane-dense
    # full-tile store into scratch (no per-t redistribute loop).
    gx_scr[...] = (jnp.dot(x_ref[...], wih_ref[...],
                           preferred_element_type=jnp.float32) + b_ref[...])

    lens = len_ref[...]                                    # (B, 1) int32
    whh = whh_ref[...]                                     # (H, 4H) bf16

    def step(j, carry):
        h, c = carry                                       # state lives in vregs
        # forward processes local t = j, backward processes t = t_chunk-1-j
        t_local = d * (t_chunk - 1) + (1 - 2 * d) * j
        row = pl.multiple_of(t_local * batch, batch)
        gates = (jnp.dot(h.astype(whh.dtype), whh,
                         preferred_element_type=jnp.float32)
                 + gx_scr[pl.ds(row, batch)])              # (B, 4H) f32
        # Gate layout is [i, f, o, g]: sigmoid only over the first 3H lanes,
        # tanh only over the last H lanes (no wasted EUP work).
        s = jax.nn.sigmoid(gates[:, :3 * H])
        g = jnp.tanh(gates[:, 3 * H:])
        i_g, f_g, o_g = s[:, :H], s[:, H:2 * H], s[:, 2 * H:3 * H]
        c_new = f_g * c + i_g * g
        h_new = o_g * jnp.tanh(c_new)

        # Packed-sequence semantics: state only advances while t < length,
        # padded positions emit zeros.
        valid = (base_t + t_local) < lens                  # (B, 1) bool
        out_ref[t_local] = jnp.where(valid, h_new, 0.0).astype(out_ref.dtype)
        return (jnp.where(valid, h_new, h), jnp.where(valid, c_new, c))

    h_fin, c_fin = lax.fori_loop(0, t_chunk, step, (h_scr[...], c_scr[...]),
                                 unroll=min(8, t_chunk))
    h_scr[...] = h_fin                                     # hand off to next chunk
    c_scr[...] = c_fin


# ----------------------------------------------------------------------------
# Wrapper: one bidirectional layer.
# ----------------------------------------------------------------------------
def _pick_time_chunk(seq_len, batch, d_in, hidden, out_bytes, vmem_limit_bytes):
    """Largest time chunk whose working set fits the VMEM budget."""
    per_t = batch * (2 * d_in * 2              # x chunk (bf16), double-buffered
                     + 2 * hidden * out_bytes  # out chunk (per dir), 2 buffers
                     + 4 * hidden * 4)         # gx scratch (f32), single buffer
    fixed = ((d_in + hidden) * 4 * hidden * 2 * 2   # Wih^T + Whh^T bf16, 2 bufs
             + 4 * hidden * 4 * 2                   # bias f32, 2 bufs
             + 2 * batch * hidden * 4               # h / c state scratch
             + (2 << 20))                           # compiler slack
    budget = (vmem_limit_bytes * 9) // 10
    cap = max(1, (budget - fixed) // max(per_t, 1))
    cap = min(cap, seq_len)
    if cap >= 8:
        cap -= cap % 8                             # keep Tc*B sublane-friendly
    return max(1, cap)


def bilstm_layer(x_tbd, lengths_b1, wih, whh, bias, *, out_dtype=jnp.float32,
                 t_chunk=None, vmem_limit_bytes=None):
    """x_tbd: (T,B,Din) bf16 -> (T,B,2H); [..., :H] forward, [..., H:] backward."""
    T, B, Din = x_tbd.shape
    H = whh.shape[1]
    if vmem_limit_bytes is None:
        vmem_limit_bytes = _default_vmem_limit()
    out_bytes = jnp.dtype(out_dtype).itemsize
    if t_chunk is None:
        t_chunk = _pick_time_chunk(T, B, Din, H, out_bytes, vmem_limit_bytes)
    t_chunk = max(1, min(t_chunk, T))
    n_chunks = -(-T // t_chunk)
    T_pad = n_chunks * t_chunk
    if T_pad != T:
        # Padded times are >= every length -> masked to zero, state frozen.
        x_tbd = jnp.pad(x_tbd, ((0, T_pad - T), (0, 0), (0, 0)))
    # Rows ordered (t_local, b) within each chunk -> one lane-dense GEMM operand.
    x_chunks = x_tbd.reshape(n_chunks, t_chunk * B, Din)

    def chunk_of(d, i):
        # forward (d=0): chunks 0..n-1; backward (d=1): chunks n-1..0
        return d * (n_chunks - 1) + (1 - 2 * d) * i

    # Lane-dense fused concat: write fwd/bwd directly into the two H-wide
    # halves of a (T, B, 2H) output.  Needs H % 128 == 0 for a legal/dense
    # lane block; otherwise fall back to (2, T, B, H) + an XLA transpose.
    fuse_concat = (H % 128 == 0)
    if fuse_concat:
        out_shape = jax.ShapeDtypeStruct((T_pad, B, 2 * H), out_dtype)
        out_spec = pl.BlockSpec((t_chunk, B, H),
                                lambda d, i: (chunk_of(d, i), 0, d))
    else:
        # TODO(synk): pad H to a multiple of 128 in production so this fallback
        # (an extra HBM round-trip per layer) is never taken.
        out_shape = jax.ShapeDtypeStruct((2, T_pad, B, H), out_dtype)
        out_spec = pl.BlockSpec((None, t_chunk, B, H),
                                lambda d, i: (d, chunk_of(d, i), 0, 0))

    kernel = functools.partial(bilstm_kernel, hidden=H, t_chunk=t_chunk, batch=B)
    out = pl.pallas_call(
        kernel,
        out_shape=out_shape,
        grid_spec=pltpu.PrefetchScalarGridSpec(
            num_scalar_prefetch=0,
            grid=(2, n_chunks),
            in_specs=[
                pl.BlockSpec((B, 1), lambda d, i: (0, 0)),                 # lengths
                pl.BlockSpec((None, t_chunk * B, Din),
                             lambda d, i: (chunk_of(d, i), 0, 0)),         # x chunk
                pl.BlockSpec((None, Din, 4 * H), lambda d, i: (d, 0, 0)),  # W_ih^T
                pl.BlockSpec((None, H, 4 * H), lambda d, i: (d, 0, 0)),    # W_hh^T
                pl.BlockSpec((None, 1, 4 * H), lambda d, i: (d, 0, 0)),    # bias
            ],
            out_specs=out_spec,
            scratch_shapes=[
                pltpu.VMEM((B, H), jnp.float32),                 # h
                pltpu.VMEM((B, H), jnp.float32),                 # c
                pltpu.VMEM((t_chunk * B, 4 * H), jnp.float32),   # gates_x (+bias)
            ]),
        compiler_params=pltpu.CompilerParams(
            dimension_semantics=("parallel", "arbitrary"),
            vmem_limit_bytes=vmem_limit_bytes),
    )(lengths_b1, x_chunks, wih, whh, bias)

    if not fuse_concat:
        out = jnp.transpose(out, (1, 2, 0, 3)).reshape(T_pad, B, 2 * H)
    return out[:T] if T_pad != T else out


# ----------------------------------------------------------------------------
# Parameter construction (deterministic, PyTorch-LSTM-style uniform init).
# Weights are stored pre-transposed, gate columns permuted [i,f,g,o]->[i,f,o,g],
# per-direction stacked, bf16 for the MXU.
# ----------------------------------------------------------------------------
def _reorder_gates(w):
    """Rows [i, f, g, o] (PyTorch) -> [i, f, o, g] (kernel layout)."""
    i_, f_, g_, o_ = jnp.split(w, 4, axis=0)
    return jnp.concatenate([i_, f_, o_, g_], axis=0)


def init_lstm_params(key, input_size, hidden_size, num_layers):
    params = []
    bound = 1.0 / math.sqrt(hidden_size)
    for layer in range(num_layers):
        d_in = input_size if layer == 0 else 2 * hidden_size
        wih_l, whh_l, b_l = [], [], []
        for _direction in range(2):
            key, k1, k2, k3, k4 = jax.random.split(key, 5)
            w_ih = jax.random.uniform(k1, (4 * hidden_size, d_in),
                                      jnp.float32, -bound, bound)
            w_hh = jax.random.uniform(k2, (4 * hidden_size, hidden_size),
                                      jnp.float32, -bound, bound)
            b_ih = jax.random.uniform(k3, (4 * hidden_size,),
                                      jnp.float32, -bound, bound)
            b_hh = jax.random.uniform(k4, (4 * hidden_size,),
                                      jnp.float32, -bound, bound)
            wih_l.append(_reorder_gates(w_ih).T.astype(jnp.bfloat16))  # (Din, 4H)
            whh_l.append(_reorder_gates(w_hh).T.astype(jnp.bfloat16))  # (H, 4H)
            b_l.append(_reorder_gates(b_ih + b_hh).reshape(1, -1))     # (1, 4H) f32
        params.append({
            "wih": jnp.stack(wih_l),    # (2, Din, 4H) bf16
            "whh": jnp.stack(whh_l),    # (2, H, 4H)   bf16
            "bias": jnp.stack(b_l),     # (2, 1, 4H)   f32
        })
    return params


def _pad_feature_dim(x_tbd, wih, multiple=128):
    """Zero-pad the contraction dim of the layer-0 input projection to 128·k."""
    din = x_tbd.shape[-1]
    pad = (-din) % multiple
    if pad == 0:
        return x_tbd, wih
    return (jnp.pad(x_tbd, ((0, 0), (0, 0), (0, pad))),
            jnp.pad(wih, ((0, 0), (0, pad), (0, 0))))


# ----------------------------------------------------------------------------
# RNN.forward equivalent (eval mode).
# x: (B, T, input_size), lengths: (B,) -> out: (B, T, 2 * hidden_size)
# NOTE: intermediate layers flow bf16 (PyTorch keeps f32); fine at ~1e-2 tol.
# ----------------------------------------------------------------------------
def rnn_forward(x, lengths, params, *, t_chunk=None):
    B, T, _ = x.shape
    lengths_b1 = lengths.reshape(B, 1).astype(jnp.int32)
    layer_in = jnp.transpose(x, (1, 0, 2)).astype(jnp.bfloat16)   # (T,B,Din) bf16
    n_layers = len(params)
    for li, p in enumerate(params):
        wih = p["wih"]
        if li == 0:
            layer_in, wih = _pad_feature_dim(layer_in, wih)       # lane-dense GEMM
        last = li == n_layers - 1
        layer_in = bilstm_layer(layer_in, lengths_b1, wih, p["whh"], p["bias"],
                                out_dtype=jnp.float32 if last else jnp.bfloat16,
                                t_chunk=t_chunk)                   # (T,B,2H)
    return jnp.transpose(layer_in, (1, 0, 2)).astype(jnp.float32)  # (B,T,2H)


# ----------------------------------------------------------------------------
# Pure-JAX reference (lax.scan), same dtype policy and same [i,f,o,g] gate
# layout, for a correctness check.
# ----------------------------------------------------------------------------
def _ref_direction(x_tbd, wih_t, whh_t, bias, mask_tb1, reverse):
    T, B, _ = x_tbd.shape
    H = whh_t.shape[0]

    def step(carry, inp):
        h, c = carry
        x_t, m = inp
        gates = (jnp.dot(x_t, wih_t, preferred_element_type=jnp.float32)
                 + jnp.dot(h.astype(whh_t.dtype), whh_t,
                           preferred_element_type=jnp.float32)
                 + bias)
        i_g = jax.nn.sigmoid(gates[:, :H])
        f_g = jax.nn.sigmoid(gates[:, H:2 * H])
        o_g = jax.nn.sigmoid(gates[:, 2 * H:3 * H])
        g_g = jnp.tanh(gates[:, 3 * H:])
        c_new = f_g * c + i_g * g_g
        h_new = o_g * jnp.tanh(c_new)
        valid = m > 0
        return ((jnp.where(valid, h_new, h), jnp.where(valid, c_new, c)),
                jnp.where(valid, h_new, 0.0))

    xs = (x_tbd[::-1], mask_tb1[::-1]) if reverse else (x_tbd, mask_tb1)
    init = (jnp.zeros((B, H), jnp.float32), jnp.zeros((B, H), jnp.float32))
    _, outs = lax.scan(step, init, xs)
    return outs[::-1] if reverse else outs


def rnn_forward_ref(x, lengths, params):
    B, T, _ = x.shape
    mask = (jnp.arange(T)[None, :] < lengths[:, None]).astype(jnp.float32)
    mask_tb1 = mask.T[:, :, None]
    layer_in = jnp.transpose(x, (1, 0, 2)).astype(jnp.bfloat16)
    n_layers = len(params)
    for li, p in enumerate(params):
        fwd = _ref_direction(layer_in, p["wih"][0], p["whh"][0], p["bias"][0],
                             mask_tb1, reverse=False)
        bwd = _ref_direction(layer_in, p["wih"][1], p["whh"][1], p["bias"][1],
                             mask_tb1, reverse=True)
        out = jnp.concatenate([fwd, bwd], axis=-1)
        layer_in = out if li == n_layers - 1 else out.astype(jnp.bfloat16)
    return jnp.transpose(layer_in.astype(jnp.float32), (1, 0, 2))


if __name__ == "__main__":
    key = jax.random.PRNGKey(0)
    k_x, k_p, k_x2, k_p2 = jax.random.split(key, 4)

    # ---- Config 1: the small spec shapes (exercises the time-chunked grid and
    # the non-128-aligned fallback output layout). ----------------------------
    batch, seq_len, input_size, hidden_size, num_layers = 2, 8, 16, 32, 2
    x = jax.random.normal(k_x, (batch, seq_len, input_size), jnp.float32)
    lengths = jnp.array([8, 5], dtype=jnp.int32)
    params = init_lstm_params(k_p, input_size, hidden_size, num_layers)

    out = jax.block_until_ready(rnn_forward(x, lengths, params, t_chunk=4))
    assert out.shape == (batch, seq_len, 2 * hidden_size), out.shape
    ref = jax.block_until_ready(rnn_forward_ref(x, lengths, params))
    err = float(jnp.max(jnp.abs(out - ref)))
    assert err < 2e-2, err

    # ---- Config 2: lane/sublane-dense shapes (H % 128 == 0, B % 8 == 0)
    # exercising the fused concatenated (T,B,2H) output, multi-chunk backward
    # reversal, and T-padding (T=12 with t_chunk=8 -> T_pad=16). --------------
    b2, t2, in2, h2 = 8, 12, 16, 128
    x2 = jax.random.normal(k_x2, (b2, t2, in2), jnp.float32)
    lengths2 = jnp.array([12, 9, 12, 3, 7, 12, 5, 1], dtype=jnp.int32)
    params2 = init_lstm_params(k_p2, in2, h2, 2)
    out2 = jax.block_until_ready(rnn_forward(x2, lengths2, params2, t_chunk=8))
    assert out2.shape == (b2, t2, 2 * h2), out2.shape
    ref2 = jax.block_until_ready(rnn_forward_ref(x2, lengths2, params2))
    err2 = float(jnp.max(jnp.abs(out2 - ref2)))
    assert err2 < 2e-2, err2

    print("KERNEL_OK")
</pallas_src>

<mosaic_0001>
module attributes {stable_mosaic.version = 11 : i64} {
  func.func @bilstm_kernel(%arg0: i32, %arg1: i32, %arg2: memref<2x1xi32, #tpu.memory_space<vmem>>, %arg3: memref<1x8x128xbf16, #tpu.memory_space<vmem>>, %arg4: memref<1x128x128xbf16, #tpu.memory_space<vmem>>, %arg5: memref<1x32x128xbf16, #tpu.memory_space<vmem>>, %arg6: memref<1x1x128xf32, #tpu.memory_space<vmem>>, %arg7: memref<1x4x2x32xbf16, #tpu.memory_space<vmem>>, %arg8: memref<2x32xf32, #tpu.memory_space<vmem>>, %arg9: memref<2x32xf32, #tpu.memory_space<vmem>>, %arg10: memref<8x128xf32, #tpu.memory_space<vmem>>) attributes {dimension_semantics = [#tpu.dimension_semantics<parallel>, #tpu.dimension_semantics<arbitrary>], iteration_bounds = array<i64: 2, 2>, scalar_prefetch = 0 : i64, scratch_operands = 3 : i64, tpu.core_type = #tpu.core_type<tc>, window_params = [{pipeline_mode = #tpu.pipeline_mode<synchronous>, transform_indices = @transform_0, window_bounds = array<i64: 2, 1>}, {transform_indices = @transform_1, window_bounds = array<i64: 1, 8, 128>}, {transform_indices = @transform_2, window_bounds = array<i64: 1, 128, 128>}, {transform_indices = @transform_3, window_bounds = array<i64: 1, 32, 128>}, {transform_indices = @transform_4, window_bounds = array<i64: 1, 1, 128>}, {transform_indices = @transform_5, window_bounds = array<i64: 1, 4, 2, 32>}]} {
    %c1_i32 = arith.constant 1 : i32
    %0 = arith.muli %arg0, %c1_i32 : i32
    %c2_i32 = arith.constant 2 : i32
    %1 = arith.muli %c2_i32, %arg0 : i32
    %c1_i32_0 = arith.constant 1 : i32
    %2 = arith.subi %c1_i32_0, %1 : i32
    %3 = arith.muli %2, %arg1 : i32
    %4 = arith.addi %0, %3 : i32
    %c4_i32 = arith.constant 4 : i32
    %5 = arith.muli %4, %c4_i32 : i32
    %c0_i32 = arith.constant 0 : i32
    %6 = arith.cmpi eq, %arg1, %c0_i32 : i32
    %7 = arith.extui %6 : i1 to i32
    %c0_i32_1 = arith.constant 0 : i32
    %8 = arith.cmpi ne, %7, %c0_i32_1 : i32
    scf.if %8 {
      %cst_73 = arith.constant 0.000000e+00 : f32
      %210 = vector.broadcast %cst_73 : f32 to vector<2x32xf32>
      %c0_74 = arith.constant 0 : index
      %c0_75 = arith.constant 0 : index
      %211 = vector.load %arg8[%c0_74, %c0_75] : memref<2x32xf32, #tpu.memory_space<vmem>>, vector<2x32xf32>
      tpu.vector_store %arg8[%c0_74, %c0_75], %210 {strides = array<i32>} : memref<2x32xf32, #tpu.memory_space<vmem>>, vector<2x32xf32>,
      %cst_76 = arith.constant 0.000000e+00 : f32
      %212 = vector.broadcast %cst_76 : f32 to vector<2x32xf32>
      %c0_77 = arith.constant 0 : index
      %c0_78 = arith.constant 0 : index
      %213 = vector.load %arg9[%c0_77, %c0_78] : memref<2x32xf32, #tpu.memory_space<vmem>>, vector<2x32xf32>
      tpu.vector_store %arg9[%c0_77, %c0_78], %212 {strides = array<i32>} : memref<2x32xf32, #tpu.memory_space<vmem>>, vector<2x32xf32>,
    } else {
    }
    %c0 = arith.constant 0 : index
    %c0_2 = arith.constant 0 : index
    %c0_3 = arith.constant 0 : index
    %9 = vector.load %arg3[%c0, %c0_2, %c0_3] : memref<1x8x128xbf16, #tpu.memory_space<vmem>>, vector<1x8x128xbf16>
    %10 = vector.shape_cast %9 : vector<1x8x128xbf16> to vector<8x128xbf16>
    %c0_4 = arith.constant 0 : index
    %c0_5 = arith.constant 0 : index
    %c0_6 = arith.constant 0 : index
    %11 = vector.load %arg4[%c0_4, %c0_5, %c0_6] : memref<1x128x128xbf16, #tpu.memory_space<vmem>>, vector<1x128x128xbf16>
    %12 = vector.shape_cast %11 : vector<1x128x128xbf16> to vector<128x128xbf16>
    %cst = arith.constant dense<0.000000e+00> : vector<8x128xf32>
    %13 = tpu.matmul %10, %12, %cst {dimension_numbers = #tpu.dot_dimension_numbers<[1], [0], [0], [1], [0, 0, 1, 1], [], []>} : vector<8x128xbf16>, vector<128x128xbf16>, vector<8x128xf32> -> vector<8x128xf32>
    %c0_7 = arith.constant 0 : index
    %c0_8 = arith.constant 0 : index
    %c0_9 = arith.constant 0 : index
    %14 = vector.load %arg6[%c0_7, %c0_8, %c0_9] : memref<1x1x128xf32, #tpu.memory_space<vmem>>, vector<1x1x128xf32>
    %15 = vector.shape_cast %14 : vector<1x1x128xf32> to vector<1x128xf32>
    %16 = vector.broadcast %15 : vector<1x128xf32> to vector<8x128xf32>
    %17 = arith.addf %13, %16 : vector<8x128xf32>
    %c0_10 = arith.constant 0 : index
    %c0_11 = arith.constant 0 : index
    %18 = vector.load %arg10[%c0_10, %c0_11] : memref<8x128xf32, #tpu.memory_space<vmem>>, vector<8x128xf32>
    tpu.vector_store %arg10[%c0_10, %c0_11], %17 {strides = array<i32>} : memref<8x128xf32, #tpu.memory_space<vmem>>, vector<8x128xf32>,
    %c0_12 = arith.constant 0 : index
    %c0_13 = arith.constant 0 : index
    %19 = vector.load %arg2[%c0_12, %c0_13] : memref<2x1xi32, #tpu.memory_space<vmem>>, vector<2x1xi32>
    %c0_14 = arith.constant 0 : index
    %c0_15 = arith.constant 0 : index
    %c0_16 = arith.constant 0 : index
    %20 = vector.load %arg5[%c0_14, %c0_15, %c0_16] : memref<1x32x128xbf16, #tpu.memory_space<vmem>>, vector<1x32x128xbf16>
    %21 = vector.shape_cast %20 : vector<1x32x128xbf16> to vector<32x128xbf16>
    %c0_17 = arith.constant 0 : index
    %c0_18 = arith.constant 0 : index
    %22 = vector.load %arg8[%c0_17, %c0_18] : memref<2x32xf32, #tpu.memory_space<vmem>>, vector<2x32xf32>
    %c0_19 = arith.constant 0 : index
    %c0_20 = arith.constant 0 : index
    %23 = vector.load %arg9[%c0_19, %c0_20] : memref<2x32xf32, #tpu.memory_space<vmem>>, vector<2x32xf32>
    %c0_i32_21 = arith.constant 0 : i32
    %c3_i32 = arith.constant 3 : i32
    %24 = arith.muli %arg0, %c3_i32 : i32
    %c2_i32_22 = arith.constant 2 : i32
    %25 = arith.muli %c2_i32_22, %arg0 : i32
    %c1_i32_23 = arith.constant 1 : i32
    %26 = arith.subi %c1_i32_23, %25 : i32
    %27 = arith.muli %26, %c0_i32_21 : i32
    %28 = arith.addi %24, %27 : i32
    %c2_i32_24 = arith.constant 2 : i32
    %29 = arith.muli %28, %c2_i32_24 : i32
    %30 = tpu.assume_multiple %29, 2 : i32
    %31 = arith.truncf %22 : vector<2x32xf32> to vector<2x32xbf16>
    %cst_25 = arith.constant dense<0.000000e+00> : vector<2x128xf32>
    %32 = tpu.matmul %31, %21, %cst_25 {dimension_numbers = #tpu.dot_dimension_numbers<[1], [0], [0], [1], [0, 0, 1, 1], [], []>} : vector<2x32xbf16>, vector<32x128xbf16>, vector<2x128xf32> -> vector<2x128xf32>
    %33 = arith.index_cast %30 : i32 to index
    %c0_26 = arith.constant 0 : index
    %34 = vector.load %arg10[%33, %c0_26] : memref<8x128xf32, #tpu.memory_space<vmem>>, vector<2x128xf32>
    %35 = arith.addf %32, %34 : vector<2x128xf32>
    %36 = vector.extract_strided_slice %35 {offsets = [0, 0], sizes = [2, 96], strides = [1, 1]} : vector<2x128xf32> to vector<2x96xf32>
    %37 = arith.negf %36 : vector<2x96xf32>
    %38 = math.exp %37 : vector<2x96xf32>
    %cst_27 = arith.constant 1.000000e+00 : f32
    %39 = vector.broadcast %cst_27 : f32 to vector<2x96xf32>
    %40 = arith.addf %39, %38 : vector<2x96xf32>
    %41 = arith.divf %39, %40 : vector<2x96xf32>
    %42 = vector.extract_strided_slice %35 {offsets = [0, 96], sizes = [2, 32], strides = [1, 1]} : vector<2x128xf32> to vector<2x32xf32>
    %43 = math.tanh %42 : vector<2x32xf32>
    %44 = vector.extract_strided_slice %41 {offsets = [0, 0], sizes = [2, 32], strides = [1, 1]} : vector<2x96xf32> to vector<2x32xf32>
    %45 = vector.extract_strided_slice %41 {offsets = [0, 32], sizes = [2, 32], strides = [1, 1]} : vector<2x96xf32> to vector<2x32xf32>
    %46 = vector.extract_strided_slice %41 {offsets = [0, 64], sizes = [2, 32], strides = [1, 1]} : vector<2x96xf32> to vector<2x32xf32>
    %47 = arith.mulf %45, %23 : vector<2x32xf32>
    %48 = arith.mulf %44, %43 : vector<2x32xf32>
    %49 = arith.addf %47, %48 : vector<2x32xf32>
    %50 = math.tanh %49 : vector<2x32xf32>
    %51 = arith.mulf %46, %50 : vector<2x32xf32>
    %52 = arith.addi %5, %28 : i32
    %53 = vector.broadcast %52 : i32 to vector<2x1xi32>
    %54 = arith.cmpi slt, %53, %19 : vector<2x1xi32>
    %cst_28 = arith.constant 0.000000e+00 : f32
    %55 = vector.shape_cast %54 : vector<2x1xi1> to vector<2x1xi1>
    %56 = vector.broadcast %55 : vector<2x1xi1> to vector<2x32xi1>
    %57 = vector.broadcast %cst_28 : f32 to vector<2x32xf32>
    %58 = arith.select %56, %51, %57 : vector<2x32xi1>, vector<2x32xf32>
    %59 = arith.truncf %58 : vector<2x32xf32> to vector<2x32xbf16>
    %c0_29 = arith.constant 0 : index
    %60 = arith.index_cast %28 : i32 to index
    %c0_30 = arith.constant 0 : index
    %c0_31 = arith.constant 0 : index
    %61 = vector.load %arg7[%c0_29, %60, %c0_30, %c0_31] : memref<1x4x2x32xbf16, #tpu.memory_space<vmem>>, vector<1x1x2x32xbf16>
    %62 = vector.shape_cast %61 : vector<1x1x2x32xbf16> to vector<2x32xbf16>
    %63 = vector.shape_cast %59 : vector<2x32xbf16> to vector<1x1x2x32xbf16>
    tpu.vector_store %arg7[%c0_29, %60, %c0_30, %c0_31], %63 {strides = array<i32>} : memref<1x4x2x32xbf16, #tpu.memory_space<vmem>>, vector<1x1x2x32xbf16>,
    %64 = vector.shape_cast %54 : vector<2x1xi1> to vector<2x1xi1>
    %65 = vector.broadcast %64 : vector<2x1xi1> to vector<2x32xi1>
    %66 = arith.select %65, %51, %22 : vector<2x32xi1>, vector<2x32xf32>
    %67 = vector.shape_cast %54 : vector<2x1xi1> to vector<2x1xi1>
    %68 = vector.broadcast %67 : vector<2x1xi1> to vector<2x32xi1>
    %69 = arith.select %68, %49, %23 : vector<2x32xi1>, vector<2x32xf32>
    %c1_i32_32 = arith.constant 1 : i32
    %c3_i32_33 = arith.constant 3 : i32
    %70 = arith.muli %arg0, %c3_i32_33 : i32
    %c2_i32_34 = arith.constant 2 : i32
    %71 = arith.muli %c2_i32_34, %arg0 : i32
    %c1_i32_35 = arith.constant 1 : i32
    %72 = arith.subi %c1_i32_35, %71 : i32
    %73 = arith.muli %72, %c1_i32_32 : i32
    %74 = arith.addi %70, %73 : i32
    %c2_i32_36 = arith.constant 2 : i32
    %75 = arith.muli %74, %c2_i32_36 : i32
    %76 = tpu.assume_multiple %75, 2 : i32
    %77 = arith.truncf %66 : vector<2x32xf32> to vector<2x32xbf16>
    %cst_37 = arith.constant dense<0.000000e+00> : vector<2x128xf32>
    %78 = tpu.matmul %77, %21, %cst_37 {dimension_numbers = #tpu.dot_dimension_numbers<[1], [0], [0], [1], [0, 0, 1, 1], [], []>} : vector<2x32xbf16>, vector<32x128xbf16>, vector<2x128xf32> -> vector<2x128xf32>
    %79 = arith.index_cast %76 : i32 to index
    %c0_38 = arith.constant 0 : index
    %80 = vector.load %arg10[%79, %c0_38] : memref<8x128xf32, #tpu.memory_space<vmem>>, vector<2x128xf32>
    %81 = arith.addf %78, %80 : vector<2x128xf32>
    %82 = vector.extract_strided_slice %81 {offsets = [0, 0], sizes = [2, 96], strides = [1, 1]} : vector<2x128xf32> to vector<2x96xf32>
    %83 = arith.negf %82 : vector<2x96xf32>
    %84 = math.exp %83 : vector<2x96xf32>
    %cst_39 = arith.constant 1.000000e+00 : f32
    %85 = vector.broadcast %cst_39 : f32 to vector<2x96xf32>
    %86 = arith.addf %85, %84 : vector<2x96xf32>
    %87 = arith.divf %85, %86 : vector<2x96xf32>
    %88 = vector.extract_strided_slice %81 {offsets = [0, 96], sizes = [2, 32], strides = [1, 1]} : vector<2x128xf32> to vector<2x32xf32>
    %89 = math.tanh %88 : vector<2x32xf32>
    %90 = vector.extract_strided_slice %87 {offsets = [0, 0], sizes = [2, 32], strides = [1, 1]} : vector<2x96xf32> to vector<2x32xf32>
    %91 = vector.extract_strided_slice %87 {offsets = [0, 32], sizes = [2, 32], strides = [1, 1]} : vector<2x96xf32> to vector<2x32xf32>
    %92 = vector.extract_strided_slice %87 {offsets = [0, 64], sizes = [2, 32], strides = [1, 1]} : vector<2x96xf32> to vector<2x32xf32>
    %93 = arith.mulf %91, %69 : vector<2x32xf32>
    %94 = arith.mulf %90, %89 : vector<2x32xf32>
    %95 = arith.addf %93, %94 : vector<2x32xf32>
    %96 = math.tanh %95 : vector<2x32xf32>
    %97 = arith.mulf %92, %96 : vector<2x32xf32>
    %98 = arith.addi %5, %74 : i32
    %99 = vector.broadcast %98 : i32 to vector<2x1xi32>
    %100 = arith.cmpi slt, %99, %19 : vector<2x1xi32>
    %cst_40 = arith.constant 0.000000e+00 : f32
    %101 = vector.shape_cast %100 : vector<2x1xi1> to vector<2x1xi1>
    %102 = vector.broadcast %101 : vector<2x1xi1> to vector<2x32xi1>
    %103 = vector.broadcast %cst_40 : f32 to vector<2x32xf32>
    %104 = arith.select %102, %97, %103 : vector<2x32xi1>, vector<2x32xf32>
    %105 = arith.truncf %104 : vector<2x32xf32> to vector<2x32xbf16>
    %c0_41 = arith.constant 0 : index
    %106 = arith.index_cast %74 : i32 to index
    %c0_42 = arith.constant 0 : index
    %c0_43 = arith.constant 0 : index
    %107 = vector.load %arg7[%c0_41, %106, %c0_42, %c0_43] : memref<1x4x2x32xbf16, #tpu.memory_space<vmem>>, vector<1x1x2x32xbf16>
    %108 = vector.shape_cast %107 : vector<1x1x2x32xbf16> to vector<2x32xbf16>
    %109 = vector.shape_cast %105 : vector<2x32xbf16> to vector<1x1x2x32xbf16>
    tpu.vector_store %arg7[%c0_41, %106, %c0_42, %c0_43], %109 {strides = array<i32>} : memref<1x4x2x32xbf16, #tpu.memory_space<vmem>>, vector<1x1x2x32xbf16>,
    %110 = vector.shape_cast %100 : vector<2x1xi1> to vector<2x1xi1>
    %111 = vector.broadcast %110 : vector<2x1xi1> to vector<2x32xi1>
    %112 = arith.select %111, %97, %66 : vector<2x32xi1>, vector<2x32xf32>
    %113 = vector.shape_cast %100 : vector<2x1xi1> to vector<2x1xi1>
    %114 = vector.broadcast %113 : vector<2x1xi1> to vector<2x32xi1>
    %115 = arith.select %114, %95, %69 : vector<2x32xi1>, vector<2x32xf32>
    %c2_i32_44 = arith.constant 2 : i32
    %c3_i32_45 = arith.constant 3 : i32
    %116 = arith.muli %arg0, %c3_i32_45 : i32
    %c2_i32_46 = arith.constant 2 : i32
    %117 = arith.muli %c2_i32_46, %arg0 : i32
    %c1_i32_47 = arith.constant 1 : i32
    %118 = arith.subi %c1_i32_47, %117 : i32
    %119 = arith.muli %118, %c2_i32_44 : i32
    %120 = arith.addi %116, %119 : i32
    %c2_i32_48 = arith.constant 2 : i32
    %121 = arith.muli %120, %c2_i32_48 : i32
    %122 = tpu.assume_multiple %121, 2 : i32
    %123 = arith.truncf %112 : vector<2x32xf32> to vector<2x32xbf16>
    %cst_49 = arith.constant dense<0.000000e+00> : vector<2x128xf32>
    %124 = tpu.matmul %123, %21, %cst_49 {dimension_numbers = #tpu.dot_dimension_numbers<[1], [0], [0], [1], [0, 0, 1, 1], [], []>} : vector<2x32xbf16>, vector<32x128xbf16>, vector<2x128xf32> -> vector<2x128xf32>
    %125 = arith.index_cast %122 : i32 to index
    %c0_50 = arith.constant 0 : index
    %126 = vector.load %arg10[%125, %c0_50] : memref<8x128xf32, #tpu.memory_space<vmem>>, vector<2x128xf32>
    %127 = arith.addf %124, %126 : vector<2x128xf32>
    %128 = vector.extract_strided_slice %127 {offsets = [0, 0], sizes = [2, 96], strides = [1, 1]} : vector<2x128xf32> to vector<2x96xf32>
    %129 = arith.negf %128 : vector<2x96xf32>
    %130 = math.exp %129 : vector<2x96xf32>
    %cst_51 = arith.constant 1.000000e+00 : f32
    %131 = vector.broadcast %cst_51 : f32 to vector<2x96xf32>
    %132 = arith.addf %131, %130 : vector<2x96xf32>
    %133 = arith.divf %131, %132 : vector<2x96xf32>
    %134 = vector.extract_strided_slice %127 {offsets = [0, 96], sizes = [2, 32], strides = [1, 1]} : vector<2x128xf32> to vector<2x32xf32>
    %135 = math.tanh %134 : vector<2x32xf32>
    %136 = vector.extract_strided_slice %133 {offsets = [0, 0], sizes = [2, 32], strides = [1, 1]} : vector<2x96xf32> to vector<2x32xf32>
    %137 = vector.extract_strided_slice %133 {offsets = [0, 32], sizes = [2, 32], strides = [1, 1]} : vector<2x96xf32> to vector<2x32xf32>
    %138 = vector.extract_strided_slice %133 {offsets = [0, 64], sizes = [2, 32], strides = [1, 1]} : vector<2x96xf32> to vector<2x32xf32>
    %139 = arith.mulf %137, %115 : vector<2x32xf32>
    %140 = arith.mulf %136, %135 : vector<2x32xf32>
    %141 = arith.addf %139, %140 : vector<2x32xf32>
    %142 = math.tanh %141 : vector<2x32xf32>
    %143 = arith.mulf %138, %142 : vector<2x32xf32>
    %144 = arith.addi %5, %120 : i32
    %145 = vector.broadcast %144 : i32 to vector<2x1xi32>
    %146 = arith.cmpi slt, %145, %19 : vector<2x1xi32>
    %cst_52 = arith.constant 0.000000e+00 : f32
    %147 = vector.shape_cast %146 : vector<2x1xi1> to vector<2x1xi1>
    %148 = vector.broadcast %147 : vector<2x1xi1> to vector<2x32xi1>
    %149 = vector.broadcast %cst_52 : f32 to vector<2x32xf32>
    %150 = arith.select %148, %143, %149 : vector<2x32xi1>, vector<2x32xf32>
    %151 = arith.truncf %150 : vector<2x32xf32> to vector<2x32xbf16>
    %c0_53 = arith.constant 0 : index
    %152 = arith.index_cast %120 : i32 to index
    %c0_54 = arith.constant 0 : index
    %c0_55 = arith.constant 0 : index
    %153 = vector.load %arg7[%c0_53, %152, %c0_54, %c0_55] : memref<1x4x2x32xbf16, #tpu.memory_space<vmem>>, vector<1x1x2x32xbf16>
    %154 = vector.shape_cast %153 : vector<1x1x2x32xbf16> to vector<2x32xbf16>
    %155 = vector.shape_cast %151 : vector<2x32xbf16> to vector<1x1x2x32xbf16>
    tpu.vector_store %arg7[%c0_53, %152, %c0_54, %c0_55], %155 {strides = array<i32>} : memref<1x4x2x32xbf16, #tpu.memory_space<vmem>>, vector<1x1x2x32xbf16>,
    %156 = vector.shape_cast %146 : vector<2x1xi1> to vector<2x1xi1>
    %157 = vector.broadcast %156 : vector<2x1xi1> to vector<2x32xi1>
    %158 = arith.select %157, %143, %112 : vector<2x32xi1>, vector<2x32xf32>
    %159 = vector.shape_cast %146 : vector<2x1xi1> to vector<2x1xi1>
    %160 = vector.broadcast %159 : vector<2x1xi1> to vector<2x32xi1>
    %161 = arith.select %160, %141, %115 : vector<2x32xi1>, vector<2x32xf32>
    %c3_i32_56 = arith.constant 3 : i32
    %c3_i32_57 = arith.constant 3 : i32
    %162 = arith.muli %arg0, %c3_i32_57 : i32
    %c2_i32_58 = arith.constant 2 : i32
    %163 = arith.muli %c2_i32_58, %arg0 : i32
    %c1_i32_59 = arith.constant 1 : i32
    %164 = arith.subi %c1_i32_59, %163 : i32
    %165 = arith.muli %164, %c3_i32_56 : i32
    %166 = arith.addi %162, %165 : i32
    %c2_i32_60 = arith.constant 2 : i32
    %167 = arith.muli %166, %c2_i32_60 : i32
    %168 = tpu.assume_multiple %167, 2 : i32
    %169 = arith.truncf %158 : vector<2x32xf32> to vector<2x32xbf16>
    %cst_61 = arith.constant dense<0.000000e+00> : vector<2x128xf32>
    %170 = tpu.matmul %169, %21, %cst_61 {dimension_numbers = #tpu.dot_dimension_numbers<[1], [0], [0], [1], [0, 0, 1, 1], [], []>} : vector<2x32xbf16>, vector<32x128xbf16>, vector<2x128xf32> -> vector<2x128xf32>
    %171 = arith.index_cast %168 : i32 to index
    %c0_62 = arith.constant 0 : index
    %172 = vector.load %arg10[%171, %c0_62] : memref<8x128xf32, #tpu.memory_space<vmem>>, vector<2x128xf32>
    %173 = arith.addf %170, %172 : vector<2x128xf32>
    %174 = vector.extract_strided_slice %173 {offsets = [0, 0], sizes = [2, 96], strides = [1, 1]} : vector<2x128xf32> to vector<2x96xf32>
    %175 = arith.negf %174 : vector<2x96xf32>
    %176 = math.exp %175 : vector<2x96xf32>
    %cst_63 = arith.constant 1.000000e+00 : f32
    %177 = vector.broadcast %cst_63 : f32 to vector<2x96xf32>
    %178 = arith.addf %177, %176 : vector<2x96xf32>
    %179 = arith.divf %177, %178 : vector<2x96xf32>
    %180 = vector.extract_strided_slice %173 {offsets = [0, 96], sizes = [2, 32], strides = [1, 1]} : vector<2x128xf32> to vector<2x32xf32>
    %181 = math.tanh %180 : vector<2x32xf32>
    %182 = vector.extract_strided_slice %179 {offsets = [0, 0], sizes = [2, 32], strides = [1, 1]} : vector<2x96xf32> to vector<2x32xf32>
    %183 = vector.extract_strided_slice %179 {offsets = [0, 32], sizes = [2, 32], strides = [1, 1]} : vector<2x96xf32> to vector<2x32xf32>
    %184 = vector.extract_strided_slice %179 {offsets = [0, 64], sizes = [2, 32], strides = [1, 1]} : vector<2x96xf32> to vector<2x32xf32>
    %185 = arith.mulf %183, %161 : vector<2x32xf32>
    %186 = arith.mulf %182, %181 : vector<2x32xf32>
    %187 = arith.addf %185, %186 : vector<2x32xf32>
    %188 = math.tanh %187 : vector<2x32xf32>
    %189 = arith.mulf %184, %188 : vector<2x32xf32>
    %190 = arith.addi %5, %166 : i32
    %191 = vector.broadcast %190 : i32 to vector<2x1xi32>
    %192 = arith.cmpi slt, %191, %19 : vector<2x1xi32>
    %cst_64 = arith.constant 0.000000e+00 : f32
    %193 = vector.shape_cast %192 : vector<2x1xi1> to vector<2x1xi1>
    %194 = vector.broadcast %193 : vector<2x1xi1> to vector<2x32xi1>
    %195 = vector.broadcast %cst_64 : f32 to vector<2x32xf32>
    %196 = arith.select %194, %189, %195 : vector<2x32xi1>, vector<2x32xf32>
    %197 = arith.truncf %196 : vector<2x32xf32> to vector<2x32xbf16>
    %c0_65 = arith.constant 0 : index
    %198 = arith.index_cast %166 : i32 to index
    %c0_66 = arith.constant 0 : index
    %c0_67 = arith.constant 0 : index
    %199 = vector.load %arg7[%c0_65, %198, %c0_66, %c0_67] : memref<1x4x2x32xbf16, #tpu.memory_space<vmem>>, vector<1x1x2x32xbf16>
    %200 = vector.shape_cast %199 : vector<1x1x2x32xbf16> to vector<2x32xbf16>
    %201 = vector.shape_cast %197 : vector<2x32xbf16> to vector<1x1x2x32xbf16>
    tpu.vector_store %arg7[%c0_65, %198, %c0_66, %c0_67], %201 {strides = array<i32>} : memref<1x4x2x32xbf16, #tpu.memory_space<vmem>>, vector<1x1x2x32xbf16>,
    %202 = vector.shape_cast %192 : vector<2x1xi1> to vector<2x1xi1>
    %203 = vector.broadcast %202 : vector<2x1xi1> to vector<2x32xi1>
    %204 = arith.select %203, %189, %158 : vector<2x32xi1>, vector<2x32xf32>
    %205 = vector.shape_cast %192 : vector<2x1xi1> to vector<2x1xi1>
    %206 = vector.broadcast %205 : vector<2x1xi1> to vector<2x32xi1>
    %207 = arith.select %206, %187, %161 : vector<2x32xi1>, vector<2x32xf32>
    %c4_i32_68 = arith.constant 4 : i32
    %c0_69 = arith.constant 0 : index
    %c0_70 = arith.constant 0 : index
    %208 = vector.load %arg8[%c0_69, %c0_70] : memref<2x32xf32, #tpu.memory_space<vmem>>, vector<2x32xf32>
    tpu.vector_store %arg8[%c0_69, %c0_70], %204 {strides = array<i32>} : memref<2x32xf32, #tpu.memory_space<vmem>>, vector<2x32xf32>,
    %c0_71 = arith.constant 0 : index
    %c0_72 = arith.constant 0 : index
    %209 = vector.load %arg9[%c0_71, %c0_72] : memref<2x32xf32, #tpu.memory_space<vmem>>, vector<2x32xf32>
    tpu.vector_store %arg9[%c0_71, %c0_72], %207 {strides = array<i32>} : memref<2x32xf32, #tpu.memory_space<vmem>>, vector<2x32xf32>,
    return
  }
  func.func @transform_0(%arg0: i32, %arg1: i32) -> (i32, i32) {
    %c0_i32 = arith.constant 0 : i32
    %c0_i32_0 = arith.constant 0 : i32
    %c0_i32_1 = arith.constant 0 : i32
    return %c0_i32, %c0_i32_0 : i32, i32
  }
  func.func @transform_1(%arg0: i32, %arg1: i32) -> (i32, i32, i32) {
    %c1_i32 = arith.constant 1 : i32
    %0 = arith.muli %arg0, %c1_i32 : i32
    %c2_i32 = arith.constant 2 : i32
    %1 = arith.muli %c2_i32, %arg0 : i32
    %c1_i32_0 = arith.constant 1 : i32
    %2 = arith.subi %c1_i32_0, %1 : i32
    %3 = arith.muli %2, %arg1 : i32
    %4 = arith.addi %0, %3 : i32
    %c0_i32 = arith.constant 0 : i32
    %c0_i32_1 = arith.constant 0 : i32
    %c0_i32_2 = arith.constant 0 : i32
    return %4, %c0_i32, %c0_i32_1 : i32, i32, i32
  }
  func.func @transform_2(%arg0: i32, %arg1: i32) -> (i32, i32, i32) {
    %c0_i32 = arith.constant 0 : i32
    %c0_i32_0 = arith.constant 0 : i32
    %c0_i32_1 = arith.constant 0 : i32
    return %arg0, %c0_i32, %c0_i32_0 : i32, i32, i32
  }
  func.func @transform_3(%arg0: i32, %arg1: i32) -> (i32, i32, i32) {
    %c0_i32 = arith.constant 0 : i32
    %c0_i32_0 = arith.constant 0 : i32
    %c0_i32_1 = arith.constant 0 : i32
    return %arg0, %c0_i32, %c0_i32_0 : i32, i32, i32
  }
  func.func @transform_4(%arg0: i32, %arg1: i32) -> (i32, i32, i32) {
    %c0_i32 = arith.constant 0 : i32
    %c0_i32_0 = arith.constant 0 : i32
    %c0_i32_1 = arith.constant 0 : i32
    return %arg0, %c0_i32, %c0_i32_0 : i32, i32, i32
  }
  func.func @transform_5(%arg0: i32, %arg1: i32) -> (i32, i32, i32, i32) {
    %c1_i32 = arith.constant 1 : i32
    %0 = arith.muli %arg0, %c1_i32 : i32
    %c2_i32 = arith.constant 2 : i32
    %1 = arith.muli %c2_i32, %arg0 : i32
    %c1_i32_0 = arith.constant 1 : i32
    %2 = arith.subi %c1_i32_0, %1 : i32
    %3 = arith.muli %2, %arg1 : i32
    %4 = arith.addi %0, %3 : i32
    %c0_i32 = arith.constant 0 : i32
    %c0_i32_1 = arith.constant 0 : i32
    %c0_i32_2 = arith.constant 0 : i32
    return %arg0, %4, %c0_i32, %c0_i32_1 : i32, i32, i32, i32
  }
}

</mosaic_0001>

<bundles_post_ra>
// kernel: tpu_custom_call.1
= control target key start
LH: loop header
LB: loop body
LE: loop exit
PB: predicated region body
PF: predicated region fallthrough
CT: control target
= control target key end

     0   :  { %s2301_s0 = inlined_call_operand.vmem [shape: s32[2,1], index: 0, kind: input, shape index: {}]   ;;  %s2302_s1 = inlined_call_operand.hbm [shape: bf16[2,8,128], index: 1, kind: input, shape index: {}]   ;;  %s2303_s2 = inlined_call_operand.hbm [shape: bf16[2,128,128], index: 2, kind: input, shape index: {}]   ;;  %s2304_s3 = inlined_call_operand.hbm [shape: bf16[2,32,128], index: 3, kind: input, shape index: {}]   ;;  %s2305_s4 = inlined_call_operand.vmem [shape: f32[2,1,128], index: 4, kind: input, shape index: {}]   ;;  %s2306_s5 = inlined_call_operand.hbm [shape: bf16[2,8,2,32], index: 5, kind: output, shape index: {}]  }
   0x1   :  { %2328 = sst [smem:[#allocation27_spill]] %s2301_s0 }
   0x2   :  { %2329 = sst [smem:[#allocation28_spill]] %s2303_s2 }
   0x3   :  { %2330 = sst [smem:[#allocation29_spill]] %s2305_s4 }
   0x4   :  { %2331 = sst [smem:[#allocation30_spill]] %s2306_s5 }
   0x5   :  { %10 = vsyncpa [#allocation6], 0 }
   0x6   :  { %12 = vsyncpa [#allocation6 + $0x1], 0 }
   0x7   :  { %13 = vsyncpa [#allocation9], 0 }
   0x8   :  { %15 = vsyncpa [#allocation9 + $0x1], 0 }
   0x9   :  { %16 = vsyncpa [#allocation7], 0 }
   0xa   :  { %18 = vsyncpa [#allocation7 + $0x1], 0  ;;  %s1759_s18 = smov 0   ;;  %s1761_s19 = smov 0  }
   0xb   :  { %s1763_s20 = smov 0   ;;  %s1765_s21 = smov 0  }
   0xc   :  { %s1767_s22 = smov 0   ;;  %s1769_s23 = smov 0  }
   0xd   :  { %s1771_s24 = smov 0   ;;  %s1773_s25 = smov 0  }
   0xe   :  { %s1775_s26 = smov 0   ;;  %s1777_s27 = smov 0  }
   0xf   :  { %s1779_s28 = smov 0   ;;  %s1781_s29 = smov 0  }
  0x10   :  { %s1783_s30 = smov 0   ;;  %s1785_s6 = smov 0  }
  0x11 LB: > { %2332 = sst [smem:[#allocation15_spill]] %s1679_s23  ;;  %p80_p0 = scmp.eq.s32.totalorder %s1711_s6, 0  ;;  %s1711_s6 = sphi %s1785_s6, %s24_s6   ;;  %s1707_s30 = sphi %s1783_s30, %s2392_s30   ;;  %s1703_s29 = sphi %s1781_s29, %s2381_s29   ;;  %s1699_s28 = sphi %s1779_s28, %s2391_s28   ;;  %s1695_s27 = sphi %s1777_s27, %s2380_s27   ;;  %s1691_s26 = sphi %s1775_s26, %s2379_s26   ;;  %s1687_s25 = sphi %s1773_s25, %s2378_s25   ;;  %s1683_s24 = sphi %s1771_s24, %s2390_s24   ;;  %s1679_s23 = sphi %s1769_s23, %s2389_s23   ;;  %s1675_s22 = sphi %s1767_s22, %s2388_s22   ;;  %s1671_s21 = sphi %s1765_s21, %s2387_s21   ;;  %s1667_s20 = sphi %s1763_s20, %s2386_s20   ;;  %s1663_s19 = sphi %s1761_s19, %s2385_s19   ;;  %s1659_s18 = sphi %s1759_s18, %s2384_s18  }
  0x12   : > { %2333 = sst [smem:[#allocation16_spill]] %s1687_s25  ;;  %p105_p1 = scmp.ne.s32.totalorder %s1679_s23, %s1675_s22 }
  0x13   : > { %2334 = sst [smem:[#allocation17_spill]] %s1691_s26  ;;  %p111_p2 = scmp.ne.s32.totalorder %s1675_s22, %s1671_s21 }
  0x14   : > { %2335 = sst [smem:[#allocation18_spill]] %s1695_s27  ;;  %p107_p3 = por %p105_p1, %p80_p0 }
  0x15   : > { %2336 = sst [smem:[#allocation19_spill]] %s1699_s28  ;;  %p2319_p4 = scmp.lt.s32.totalorder %s1711_s6, 4 }
  0x16   : > { %2337 = sst [smem:[#allocation20_spill]] %s1703_s29  ;;  %s248_s7 = sand.u32 1, %s1711_s6  }
  0x17   : > { %s250_s8 = sand.u32 1, %s1679_s23   ;;  %s1212_s10 = sshll.u32 %s1707_s30, 10 }
  0x18   : > { %s1168_s9 = sshll.u32 %s250_s8, 6  ;;  %s2338_s2 = sld [smem:[#allocation28_spill]] }
  0x19   : > { %s252_s14 = scalar_lea.vmem [#allocation8], %s1168_s9  ;;  %p1845_p5 = pnand %p2319_p4, %p107_p3 }
  0x1a   : > { %s259_s15 = sshll.u32 %s252_s14, 4  ;;  %s1171_s17 = sshll.u32 %s250_s8, 4  ;;  %s260_s15 = int_to_ptr.vmem [resolvable:$true] %s259_s15 }
  0x1b   : > { %s2339_s16 = scalar_select %p1845_p5, 1, 0 }
  0x1c   : > { %s1849_s5 = scalar_lea.sflag [#allocation9], %s248_s7  ;;  %p2318_p6 = pneg %p1845_p5 }
  0x1d   : > { %s1492_s0 = scalar_lea.vmem %s260_s15, 1024  ;;  %s1713_s9 = smov [#allocation8]  }
  0x1e   : > { %s258_s13 = scalar_lea.hbm %s2338_s2, %s1212_s10  ;;  %p1493_p7 = scmp.ne.s32.totalorder %s260_s15, %s1492_s0 }
  0x1f   : > { %s1497_s10 = sshll.u32 %s1713_s9, 4  ;;  %s1498_s10 = int_to_ptr.vmem [resolvable:$false] %s1497_s10 }
  0x20   : > { %p1495_p8 = pnand %p1493_p7, %p2318_p6  ;;  %s1499_s11 = scalar_lea.vmem %s1498_s10, 2048 }
  0x21   : > { %p1500_p10 = scmp.lt.s32.totalorder %s260_s15, %s1498_s10  ;;  %p1501_p11 = scmp.lt.s32.totalorder %s1499_s11, %s1492_s0 }
  0x22   : > { %p1496_p9 = pneg %p1495_p8 }
  0x23   : > { %p1502_p12 = por %p1501_p11, %p1500_p10 }
  0x25   : > { %p1503_p13 = pnand %p1502_p12, %p1496_p9 }
  0x27   : > { %1506 = shalt.err (!%p1503_p13)
}
  0x28   : > { %s2308_s8 = smov 64   ;;  %s2309_s7 = smov 4  }
  0x29   : > { %1301 = dma.hbm_to_vmem [thread:$0]  (!%p1845_p5), %s258_s13, 1024, %s260_s15, %s1849_s5, %s2308_s8, %s2308_s8, %s2309_s7  }
  0x2a   : > { %p1174_p1 = scmp.ge.s32.totalorder %s1711_s6, 1  ;;  %s273_s0 = scalar_lea.vmem [#allocation10], %s1171_s17 }
  0x2b   : > { %s1863_s12 = sshll.u32 %s273_s0, 4  ;;  %p294_p3 = scmp.lt.s32.totalorder %s1711_s6, 5  ;;  %s281_s12 = int_to_ptr.vmem [resolvable:$true] %s1863_s12 }
  0x2c   : > { %s1871_s9 = sadd.s32 4294967295, %s1711_s6   ;;  %s33_s13 = sadd.s32 1, %s1703_s29 }
  0x2d   : > { %p1866_p7 = pnand %p1174_p1, %p294_p3  ;;  %p34_p8 = scmp.ge.s32.totalorder %s33_s13, 2 }
  0x2e   : > { %s36_s15 = sadd.s32 1, %s1707_s30  ;;  %s1159_s17 = sshll.u32 %s1707_s30, 1 }
  0x2f   : > { %s2340_s14 = scalar_select %p1866_p7, 1, 0 }
  0x30   : > { %s72_s11 = sadd.s32 1, %s1691_s26  ;;  %s2394_s13 = smov (%p34_p8, %s33_s13), 0 }
  0x31   : > { %2341 = sst [smem:[#allocation21_spill]] %s2394_s13  ;;  %s2396_s15 = smov (!%p34_p8, %s36_s15), %s1707_s30 }
  0x32   : > { %s62_s0 = ssub.s32 1, %s1159_s17  ;;  %p79_p9 = scmp.ne.s32.totalorder %s1691_s26, %s1687_s25 }
  0x33   : > { %p38_p10 = scmp.ge.s32.totalorder %s2396_s15, 2  ;;  %s63_s8 = smul.u32 %s1703_s29, %s62_s0 }
  0x34   : > { %p1886_p11 = por %p80_p0, %p79_p9  ;;  %p85_p12 = scmp.ne.s32.totalorder %s1687_s25, %s1683_s24 }
  0x35   : > { %s2398_s15 = smov (%p38_p10, %s2396_s15), 0  ;;  %s1895_s17 = sadd.s32 %s1707_s30, %s63_s8 }
  0x36   : > { %2343 = sst [smem:[#allocation22_spill]] %s2398_s15  ;;  %p86_p13 = scmp.eq.s32.totalorder %s1871_s9, 0 }
  0x37   : > { %s1160_s0 = sshll.u32 %s2398_s15, 1  ;;  %s95_s10 = ssub.s32 %s1707_s30, %s2398_s15 }
  0x38   : > { %s66_s2 = ssub.s32 1, %s1160_s0  ;;  %p1901_p0 = por %p86_p13, %p85_p12 }
  0x39   : > { %s67_s24 = smul.u32 %s66_s2, %s2394_s13  ;;  %p96_p1 = scmp.eq.s32.totalorder %s95_s10, 0 }
  0x3a   : > { %s2344_s29 = scalar_select %p1901_p0, 1, 0 }
  0x3b   : > { %s98_s8 = sadd.s32 1, %s1679_s23  ;;  %p1910_p3 = por %p111_p2, %p86_p13 }
  0x3c   : > { %2345 = sst [smem:[#allocation23_spill]] %s2344_s29  ;;  %s68_s27 = sadd.s32 %s67_s24, %s2398_s15 }
  0x3d   : > { %s2346_s4 = scalar_select %p1910_p3, 1, 0 }
  0x3e   : > { %s186_s0 = sadd.s32 1, %s1667_s20  ;;  %s69_s28 = ssub.s32 %s1895_s17, %s68_s27 }
  0x3f   : > { %p196_p8 = scmp.ne.s32.totalorder %s1667_s20, %s1663_s19  ;;  %p70_p9 = scmp.eq.s32.totalorder %s69_s28, 0 }
  0x40   : > { %s183_s25 = sor.u32 %s95_s10, %s69_s28  ;;  %p197_p2 = scmp.eq.s32.totalorder %s1871_s9, 3 }
  0x41   : > { %s1920_s29 = scalar_select %p96_p1, %s1679_s23, %s98_s8  }
  0x42   : > { %s1923_s2 = scalar_select %p70_p9, %s1691_s26, %s72_s11  }
  0x43   : > { %2347 = sst [smem:[#allocation24_spill]] %s1920_s29  ;;  %p184_p10 = scmp.eq.s32.totalorder %s183_s25, 0 }
  0x44   : > { %2348 = sst [smem:[#allocation25_spill]] %s1923_s2  ;;  %p202_p12 = scmp.ne.s32.totalorder %s1663_s19, %s1659_s18 }
  0x45   : > { %s2349_s21 = sadd.s32 4294967294, %s1711_s6   ;;  %p1933_p6 = por %p197_p2, %p196_p8 }
  0x46   : > { %p203_p13 = scmp.eq.s32.totalorder %s2349_s21, 3  ;;  %s226_s28 = sand.u32 1, %s1691_s26  }
  0x47   : > { %s1931_s13 = scalar_select %p184_p10, %s1667_s20, %s186_s0  }
  0x48   : > { %s2351_s24 = scalar_select %p1933_p6, 1, 0 }
  0x49   : > { %2350 = sst [smem:[#allocation26_spill]] %s1931_s13  ;;  %p1937_p4 = por %p203_p13, %p202_p12 }
  0x4a   : > { %s1167_s10 = sshll.u32 %s1895_s17, 6  ;;  %s1165_s11 = sshll.u32 %s226_s28, 2 }
  0x4b   : > { %s2352_s27 = scalar_select %p1937_p4, 1, 0 }
  0x4c   : > { %s1946_s25 = scalar_lea.hbm %s2302_s1, %s1167_s10  ;;  %s230_s0 = scalar_lea.vmem [#allocation5], %s1165_s11 }
  0x4d   : > { %s241_s21 = sshll.u32 %s230_s0, 4  ;;  %p2353_p1 = scmp.lt.s32.totalorder %s1711_s6, 4  ;;  %s1956_s21 = int_to_ptr.vmem [resolvable:$true] %s241_s21 }
  0x4e   : > { %s1213_s17 = sshll.u32 %s1707_s30, 8  ;;  %s227_s10 = scalar_lea.sflag [#allocation6], %s226_s28 }
  0x4f   : > { %p1952_p8 = pnand %p2353_p1, %p1886_p11  ;;  %s1962_s15 = scalar_lea.hbm %s2304_s3, %s1213_s17 }
  0x50   : > { %s1507_s8 = scalar_lea.hbm %s1946_s25, 64  ;;  %s1512_s0 = scalar_lea.hbm %s2302_s1, 128 }
  0x51   : > { %p1508_p9 = scmp.ne.s32.totalorder %s1946_s25, %s1507_s8  ;;  %p1509_p10 = pneg %p1952_p8 }
  0x52   : > { %p1513_p11 = scmp.lt.s32.totalorder %s1946_s25, %s2302_s1  ;;  %p1514_p13 = scmp.lt.s32.totalorder %s1512_s0, %s1507_s8 }
  0x53   : > { %p1510_p2 = pnand %p1509_p10, %p1508_p9 }
  0x54   : > { %p1515_p1 = por %p1514_p13, %p1513_p11 }
  0x55   : > { %p1511_p12 = pneg %p1510_p2 }
  0x57   : > { %p1516_p4 = pnand %p1515_p1, %p1511_p12 }
  0x59   : > { %1519 = shalt.err (!%p1516_p4)
}
  0x5a   : > { %s1520_s26 = scalar_lea.vmem %s1956_s21, 64  ;;  %s1716_s29 = smov [#allocation5]  }
  0x5b   : > { %p1521_p6 = scmp.ne.s32.totalorder %s1956_s21, %s1520_s26  ;;  %s1525_s28 = sshll.u32 %s1716_s29, 4  ;;  %s1526_s28 = int_to_ptr.vmem [resolvable:$false] %s1525_s28 }
  0x5c   : > { %s1527_s17 = scalar_lea.vmem %s1526_s28, 128  ;;  %p1528_p2 = scmp.lt.s32.totalorder %s1956_s21, %s1526_s28 }
  0x5d   : > { %p1523_p3 = pnand %p1521_p6, %p1509_p10  ;;  %p1529_p0 = scmp.lt.s32.totalorder %s1527_s17, %s1520_s26 }
  0x5f   : > { %p1524_p9 = pneg %p1523_p3  ;;  %p1530_p7 = por %p1529_p0, %p1528_p2 }
  0x61   : > { %p1531_p5 = pnand %p1530_p7, %p1524_p9 }
  0x63   : > { %1534 = shalt.err (!%p1531_p5)
}
  0x64   : > { %1298 = dma.hbm_to_vmem [thread:$0]  (!%p1952_p8), %s1946_s25, 64, %s1956_s21, %s227_s10  }
  0x65   : > { %s1548_s23 = scalar_lea.vmem %s281_s12, 256  ;;  %p2355_p6 = scmp.ne.s32.totalorder %s2339_s16, 0 }
  0x66   : > { %p1549_p4 = scmp.ne.s32.totalorder %s281_s12, %s1548_s23  ;;  %s1717_s13 = smov [#allocation10]  }
  0x67   : > { %p2356_p3 = pneg %p2355_p6  ;;  %s1553_s8 = sshll.u32 %s1717_s13, 4  ;;  %s1554_s8 = int_to_ptr.vmem [resolvable:$false] %s1553_s8 }
  0x68   : > { %s1555_s7 = scalar_lea.vmem %s1554_s8, 512  ;;  %p1556_p7 = scmp.lt.s32.totalorder %s281_s12, %s1554_s8 }
  0x69   : > { %p1551_p10 = pnand %p1549_p4, %p2356_p3  ;;  %p1557_p5 = scmp.lt.s32.totalorder %s1555_s7, %s1548_s23 }
  0x6b   : > { %p1552_p12 = pneg %p1551_p10  ;;  %p1558_p0 = por %p1557_p5, %p1556_p7 }
  0x6d   : > { %p1559_p11 = pnand %p1558_p0, %p1552_p12 }
  0x6f   : > { %1562 = shalt.err (!%p1559_p11)
}
  0x70   : > { %s2357_s2 = smov 4   ;;  %s2358_s25 = smov 64  }
  0x71   : > { %1304 = dma.hbm_to_vmem [thread:$0]  (!%p2355_p6), %s1962_s15, 256, %s281_s12, %s1849_s5, %s2358_s25, %s2358_s25, %s2357_s2  }
  0x72   : > { %p2359_p8 = scmp.ne.s32.totalorder %s2340_s14, 0 }
  0x73   : > { %s2360_s21 = sld [smem:[#allocation16_spill]] (!%p2359_p8) }
  0x74   : > { %298 = sbr.rel (%p2359_p8) target bundleno = 2977 (0xba1), region = 40  ;;  %s2361_s10 = sld [smem:[#allocation23_spill]] (!%p2359_p8) }
  0x79   : > { %s300_s11 = sand.u32 1, %s2360_s21  }
  0x7a   : > { %s1996_s0 = sshll.u32 %s300_s11, 2  ;;  %s301_s26 = scalar_lea.sflag [#allocation6], %s300_s11 }
  0x7b   : > { %s304_s29 = scalar_lea.vmem [#allocation5], %s1996_s0  ;;  %p2362_p13 = scmp.ne.s32.totalorder %s2361_s10, 0 }
  0x7d   : > { %1646 = dma.done.wait (%p2362_p13), %s301_s26, 64  }
  0x7e   : > { %1648 = vsyncadd (%p2362_p13), %s301_s26, 4294967232  ;;  %s309_s5 = sand.u32 1, %s1871_s9   ;;  %s311_s16 = sand.u32 1, %s1675_s22  }
  0x7f   : > { %s1176_s12 = sshll.u32 %s311_s16, 6  ;;  %s310_s14 = scalar_lea.sflag [#allocation9], %s309_s5 }
  0x80   : > { %s2005_s15 = scalar_lea.vmem [#allocation8], %s1176_s12  ;;  %p2363_p1 = scmp.ne.s32.totalorder %s2346_s4, 0 }
  0x82   : > { %1650 = dma.done.wait (%p2363_p1), %s310_s14, 1280  }
  0x83   : > { %1652 = vsyncadd (%p2363_p1), %s310_s14, 4294966016  ;;  %s2364_s28 = sld [smem:[#allocation19_spill]]  ;;  %s2011_s23 = sshll.u32 %s311_s16, 4 }
  0x84   : > { %s2365_s17 = sld [smem:[#allocation18_spill]]  ;;  %s359_s9 = sand.u32 1, %s1663_s19  }
  0x85   : > { %s1178_s13 = sshll.u32 %s359_s9, 2  ;;  %s2366_s21 = sld [smem:[#allocation29_spill]] }
  0x86   : > { %s322_s16 = scalar_lea.vmem [#allocation10], %s2011_s23  ;;  %s2033_s12 = scalar_lea.vmem [#allocation11], %s1178_s13 }
  0x89   : > { %p366_p9 = scmp.lt.s32.totalorder %s2364_s28, 1  ;;  %s1179_s8 = sshll.u32 %s2364_s28, 1 }
  0x8a   : > { %s2021_s4 = ssub.s32 1, %s1179_s8  ;;  %p1181_p2 = scmp.ne.s32.totalorder %s2365_s17, 0 }
  0x8b   : > { %s2019_s7 = scalar_select %p366_p9, %s2364_s28, 1 }
  0x8c   : > { %s377_s11 = smul.u32 %s2365_s17, %s2021_s4 }
  0x8d   : > { %s368_s10 = scalar_lea.vmem %s2366_s21, %s2019_s7  ;;  %383 = sbr.rel (%p1181_p2) target bundleno = 148 (0x94), region = 56 }
  0x8e   : > { %s378_s26 = sadd.s32 %s2364_s28, %s377_s11 }
  0x8f   : > { %s2030_s5 = sshll.u32 %s378_s26, 2 }
  0x92   : > { %vm384_vm0 = vcmask 254976   ;;  %v1718_v0 = vmov 0.0  }
  0x93   : > { %385 = vst.msk [vmem:[#allocation2] sm:$0x3] %vm384_vm0, %v1718_v0  ;;  %386 = vst.msk [vmem:[#allocation3] sm:$0x3] %vm384_vm0, %v1718_v0 }
  0x94 PF: > { %v1437_v1 = vld [vmem:[%s2005_s15 + $0x38] sm:$0xff]   ;;  %v1719_v2 = vmov 0.0   ;;  %v1438_v3 = vld [vmem:[%s2005_s15 + $0x30] sm:$0xff]   ;;  %vm1720_vm1 = vmmov 0   ;;  %v1439_v4 = vld [vmem:[%s2005_s15 + $0x28] sm:$0xff]   ;;  %vm524_vm2 = vcmask 261120  }
  0x95   : > { %1235 = vmatprep.subr.bf16.mxu0 %v1719_v2  ;;  %1255 = vmatprep.subr.bf16.mxu1 %v1719_v2  ;;  %v2047_v5 = vld [vmem:[%s322_s16 + $0x8] sm:$0xff]   ;;  %v1440_v6 = vld [vmem:[%s2005_s15 + $0x20] sm:$0xff]   ;;  %v1442_v11 = vld [vmem:[%s2005_s15 + $0x10] sm:$0xff]   ;;  %s2367_s14 = sld [smem:[#allocation19_spill]]  ;;  %v1721_v27 = vmov 0   ;;  %s1722_s0 = smov 32  }
  0x96   : > { %1236 = vmatpush3.bf16.msra.mxu0 %v1437_v1  ;;  %1251 = vmatprep.mubr.msk.bf16.mxu0 %vm1720_vm1, %v1719_v2  ;;  %v2051_v7 = vld [vmem:[%s322_s16] sm:$0xff]   ;;  %v1441_v10 = vld [vmem:[%s2005_s15 + $0x18] sm:$0xff]   ;;  %v1443_v12 = vld [vmem:[%s2005_s15 + $0x8] sm:$0xff]   ;;  %s2369_s25 = sld [smem:[#allocation27_spill]]  ;;  %s1723_s21 = smov 64   ;;  %vm625_vm10 = vcmask 253952  }
  0x97   : > { %1237 = vmatprep.subr.bf16.mxu0 %v1719_v2  ;;  %1259 = vmatprep.mubr.msk.bf16.mxu1 %vm1720_vm1, %v1719_v2  ;;  %v1444_v13 = vld [vmem:[%s2005_s15] sm:$0xff]   ;;  %v387_v14 = vld [vmem:[%s304_s29] sm:$0xf]  ;;  %v1182_v19 = vld [vmem:[%s368_s10] ss:$0 sm:$0xff]  ;;  %s1198_s28 = sshll.u32 %s2021_s4, 1 }
  0x98   : > { %1256 = vmatpush3.bf16.msra.mxu1 %v2047_v5  ;;  %1435 = vset.pattern.permute.xlu1 %v1721_v27  ;;  %vm960_vm12 = vcmask 254976   ;;  %p2371_p6 = scmp.ne.s32.totalorder %s2351_s24, 0 }
  0x99   : > { %1257 = vmatprep.subr.bf16.mxu1 %v1719_v2  ;;  %1436 = vset.pattern.permute.xlu0 %v1721_v27 }
  0x9a   : > { %1238 = vmatpush3.bf16.msra.mxu0 %v1438_v3  ;;  %v2053_v8 = vld [vmem:[#allocation2] sm:$0x3]  ;;  %v506_v29 = vld [vmem:[#allocation3] sm:$0x3] }
  0x9b   : > { %1239 = vmatprep.subr.bf16.mxu0 %v1719_v2  ;;  %v509_v9 = vpack.c.bf16 %v2053_v8, %v2053_v8  ;;  %s508_s15 = smul.u32 6, %s2367_s14 }
  0x9c   : > { %1258 = vmatpush3.bf16.msra.mxu1 %v2051_v7  ;;  %s2089_s29 = smul.u32 3, %s2367_s14  ;;  %v2096_v33 = vld [vmem:[%s2369_s25] sm:$0x3] }
  0x9d   : > { %1263 = vmatprep.subr.bf16.mxu1 %v1719_v2  ;;  %s510_s13 = scalar_lea.vmem [#allocation4], %s508_s15 }
  0x9e   : > { %1240 = vmatpush3.bf16.msra.mxu0 %v1439_v4  ;;  %s596_s8 = sadd.s32 %s2030_s5, %s2089_s29  ;;  %s2122_s10 = sadd.s32 %s2089_s29, %s2021_s4 }
  0x9f   : > { %1241 = vmatprep.subr.bf16.mxu0 %v1719_v2  ;;  %1260 = vmatmul.mubr.msk.bf16.vlgmr.msra.gmra.mxu1 %vm524_vm2, %v509_v9  ;;  %v597_v34 = vstv %s596_s8  ;;  %s1195_s11 = sshll.u32 %s2122_s10, 1  ;;  %s708_s16 = sadd.s32 %s2030_s5, %s2122_s10 }
  0xa0   : > { %1264 = vmatpush3.bf16.msra.mxu1 %v2047_v5  ;;  %1267 = vmatprep.mubr.msk.bf16.mxu1 %vm1720_vm1, %v1719_v2  ;;  %vm598_vm3 = vcmp.lt.s32.totalorder %v597_v34, %v2096_v33  ;;  %s636_s26 = scalar_lea.vmem [#allocation4], %s1195_s11  ;;  %v709_v57 = vstv %s708_s16  ;;  %s2151_s17 = sadd.s32 %s1198_s28, %s2089_s29 }
  0xa1   : > { %1265 = vmatprep.subr.bf16.mxu1 %v1719_v2  ;;  %v599_v38 = vsel %vm598_vm3, 1, %v1721_v27  ;;  %vm710_vm5 = vcmp.lt.s32.totalorder %v709_v57, %v2096_v33  ;;  %s1199_s23 = sshll.u32 %s2151_s17, 1  ;;  %s848_s8 = smul.u32 3, %s2021_s4 }
  0xa2   : > { %1242 = vmatpush3.bf16.msra.mxu0 %v1440_v6  ;;  %v711_v59 = vsel %vm710_vm5, 1, %v1721_v27  ;;  %s744_s15 = scalar_lea.vmem [#allocation4], %s1199_s23  ;;  %s624_s4 = scalar_lea.vmem %s2033_s12, %s2089_s29 [#allocation11] }
  0xa3   : > { %1243 = vmatprep.subr.bf16.mxu0 %v1719_v2  ;;  %s2175_s7 = sadd.s32 %s848_s8, %s2089_s29  ;;  %s736_s29 = scalar_lea.vmem %s2033_s12, %s2122_s10 [#allocation11] }
  0xa4   : > { %1266 = vmatpush3.bf16.msra.mxu1 %v2051_v7  ;;  %s1202_s2 = sshll.u32 %s2175_s7, 1  ;;  %s924_s11 = sadd.s32 %s2030_s5, %s2175_s7 }
  0xa5   : > { %1271 = vmatprep.subr.bf16.mxu1 %v1719_v2  ;;  %s852_s25 = scalar_lea.vmem [#allocation4], %s1202_s2  ;;  %s1208_s10 = sshll.u32 %s2367_s14, 3 }
  0xa6   : > { %1244 = vmatpush3.bf16.msra.mxu0 %v1441_v10  ;;  %s984_s16 = sadd.s32 %s1208_s10, %s2030_s5  ;;  %s952_s23 = scalar_lea.vmem %s2033_s12, %s2175_s7 [#allocation11] }
  0xa7   : > { %1245 = vmatprep.subr.bf16.mxu0 %v1719_v2  ;;  %s1209_s28 = sshll.u32 %s984_s16, 4  ;;  %s2370_s8 = sld [smem:[#allocation30_spill]] }
  0xaa   : > { %1246 = vmatpush3.bf16.msra.mxu0 %v1442_v11 }
  0xab   : > { %1247 = vmatprep.subr.bf16.mxu0 %v1719_v2 }
  0xad   : > { %s2218_s2 = scalar_lea.hbm %s2370_s8, %s1209_s28 }
  0xae   : > { %1248 = vmatpush3.bf16.msra.mxu0 %v1443_v12 }
  0xaf   : > { %1249 = vmatprep.subr.bf16.mxu0 %v1719_v2 }
  0xb2   : > { %1250 = vmatpush3.bf16.msra.mxu0 %v1444_v13 }
  0xb5   : > { %1252 = vmatmul.mubr.bf16.vlgmr.msra.gmra.mxu0 %v387_v14 }
 0x15f   : > { %v562_v15 = vpop.f32.mrf.mxu1 }
 0x161   : > { %v1261_v16 = vpop.f32.mrf.mxu1 }
 0x163   : > { %v565_v17 = vpop.f32.mrf.mxu1 }
 0x165   : > { %v1262_v18 = vpop.f32.mrf.mxu1 }
 0x175   : > { %v493_v20 = vpop.f32.mrf.mxu0 }
 0x176   : > { %v494_v21 = vadd.f32 %v1182_v19, %v493_v20 }
 0x177   : > { %v1253_v22 = vpop.f32.mrf.mxu0 }
 0x178   : > { %499 = vst [vmem:[#allocation4] sm:$0xff] %v494_v21 }
 0x179   : > { %v496_v23 = vpop.f32.mrf.mxu0 }
 0x17b   : > { %v1254_v24 = vpop.f32.mrf.mxu0 }
 0x17f   : > { %v511_v25 = vld [vmem:[%s510_s13] sm:$0x3]  ;;  %s816_s13 = sadd.s32 %s2030_s5, %s2151_s17  ;;  %s2225_s5 = scalar_lea.sflag [#allocation7], %s359_s9 }
 0x180   : > { %v563_v26 = vadd.f32 %v562_v15, %v511_v25  ;;  %v637_v51 = vld [vmem:[%s636_s26] sm:$0x3]  ;;  %v817_v21 = vstv %s816_s13  ;;  %s844_s26 = scalar_lea.vmem %s2033_s12, %s2151_s17 [#allocation11]  ;;  %s987_s17 = sshll.u32 %s2033_s12, 4  ;;  %s2220_s17 = int_to_ptr.vmem [resolvable:$true] %s987_s17 }
 0x181   : > { %v745_v16 = vld [vmem:[%s744_s15] sm:$0x3]  ;;  %vm818_vm7 = vcmp.lt.s32.totalorder %v817_v21, %v2096_v33  ;;  %s1563_s14 = scalar_lea.vmem %s2220_s17, 64  ;;  %s1726_s12 = smov [#allocation11]  }
 0x182   : > { %1447 = vtanh.f32 %v563_v26  ;;  %v1194_v30 = vmul.f32 -1.442695, %v563_v26  ;;  %p1564_p4 = scmp.ne.s32.totalorder %s2220_s17, %s1563_s14 }
 0x184   : > { %1449 = vpow2.f32 %v1194_v30  ;;  %p1565_p3 = pnand %p1564_p4, %p2371_p6 }
 0x186   : > { %p1566_p10 = pneg %p1565_p3 }
 0x18f   : > { %v1448_v28 = vpop.eup %1447 }
 0x190   : > { %581 = vrot.lane.b32.xlu0 %v1448_v28, %s1722_s0 }
 0x191   : > { %v1450_v31 = vpop.eup %1449 }
 0x192   : > { %v571_v32 = vadd.f32 1.0, %v1450_v31 }
 0x194   : > { %576 = vrot.lane.b32.xlu0 %v506_v29, %s1722_s0  ;;  %1451 = vrcp.f32 %v571_v32 }
 0x1a1   : > { %v1452_v35 = vpop.eup %1451 }
 0x202   : > { %v582_v36 = vpop.permute.xlu0 %581 }
 0x203   : > { %v584_v37 = vmul.f32 %v1452_v35, %v582_v36 }
 0x205   : > { %586 = vrot.lane.b32.xlu1 %v584_v37, %s1722_s0 }
 0x206   : > { %v577_v39 = vpop.permute.xlu0 %576 }
 0x207   : > { %v579_v40 = vmul.f32 %v1452_v35, %v577_v39 }
 0x209   : > { %601 = vperm.xlu1 %1435, %v599_v38  }
 0x20d   : > { %628 = vrot.lane.b32.xlu1 %v2053_v8, %s1723_s21 }
 0x277   : > { %v587_v41 = vpop.permute.xlu1 %586 }
 0x278   : > { %v589_v42 = vadd.f32 %v587_v41, %v579_v40  ;;  %v853_v41 = vld [vmem:[%s852_s25] sm:$0x3] }
 0x27a   : > { %1453 = vtanh.f32 %v589_v42 }
 0x284   : > { %v2104_v44 = vpop.permute.xlu1 %601 }
 0x285   : > { %vm603_vm4 = vcmp.eq.s32.totalorder %v2104_v44, 1 }
 0x286   : > { %v632_v3 = vsel %vm603_vm4, %v589_v42, %v577_v39 }
 0x287   : > { %v1454_v43 = vpop.eup %1453 }
 0x288   : > { %592 = vrot.lane.b32.xlu0 %v1454_v43, %s1722_s0  ;;  %v629_v46 = vpop.permute.xlu1 %628 }
 0x2fa   : > { %v593_v45 = vpop.permute.xlu0 %592 }
 0x2fb   : > { %v2106_v47 = vmul.f32 %v1452_v35, %v593_v45 }
 0x2fd   : > { %v631_v48 = vsel %vm603_vm4, %v2106_v47, %v629_v46 }
 0x2fe   : > { %v635_v49 = vpack.c.bf16 %v631_v48, %v631_v48 }
 0x300   : > { %639 = vrot.lane.b32.xlu0 %v635_v49, %s1723_s21  ;;  %v1724_v49 = vmov 1966171168  }
 0x372   : > { %v640_v50 = vpop.permute.xlu0 %639 }
 0x373   : > { %1268 = vmatmul.mubr.msk.bf16.vlgmr.msra.gmra.mxu1 %vm524_vm2, %v640_v50  ;;  %v608_v50 = vunpack.c.l.s4 %v1724_v49 }
 0x374   : > { %1272 = vmatpush3.bf16.msra.mxu1 %v2047_v5  ;;  %1275 = vmatprep.mubr.msk.bf16.mxu1 %vm1720_vm1, %v1719_v2 }
 0x375   : > { %1273 = vmatprep.subr.bf16.mxu1 %v1719_v2 }
 0x378   : > { %1274 = vmatpush3.bf16.msra.mxu1 %v2051_v7 }
 0x379   : > { %1279 = vmatprep.subr.bf16.mxu1 %v1719_v2 }
 0x433   : > { %v678_v52 = vpop.f32.mrf.mxu1 }
 0x434   : > { %v679_v53 = vadd.f32 %v678_v52, %v637_v51  ;;  %v610_v51 = vlaneseq  ;;  %v609_v52 = vunpack.c.0.s8 %v608_v50 }
 0x435   : > { %v1269_v54 = vpop.f32.mrf.mxu1 }
 0x436   : > { %1455 = vtanh.f32 %v679_v53  ;;  %v1197_v60 = vmul.f32 -1.442695, %v679_v53  ;;  %v611_v53 = vshrl.u32 %v610_v51, 7  ;;  %v604_v54 = vsel %vm603_vm4, %v2106_v47, 0.0 }
 0x437   : > { %v681_v55 = vpop.f32.mrf.mxu1  ;;  %v605_v57 = vpack.c.bf16 %v604_v54, %v604_v54 }
 0x438   : > { %1457 = vpow2.f32 %v1197_v60  ;;  %v925_v55 = vstv %s924_s11 }
 0x439   : > { %v1270_v56 = vpop.f32.mrf.mxu1  ;;  %vm926_vm9 = vcmp.lt.s32.totalorder %v925_v55, %v2096_v33 }
 0x43a   : > { %v612_v56 = vsub.s32 %v609_v52, %v611_v53  ;;  %v927_v60 = vsel %vm926_vm9, 1, %v1721_v27 }
 0x443   : > { %v1456_v58 = vpop.eup %1455 }
 0x444   : > { %693 = vrot.lane.b32.xlu1 %v1456_v58, %s1722_s0 }
 0x445   : > { %v1458_v61 = vpop.eup %1457 }
 0x446   : > { %v687_v62 = vadd.f32 1.0, %v1458_v61  ;;  %v613_v61 = vrot.slane %v605_v57, %v612_v56 }
 0x448   : > { %713 = vperm.xlu1 %1435, %v711_v59   ;;  %1459 = vrcp.f32 %v687_v62  ;;  %v620_v44 = vrot.slane %v613_v61, %v612_v56 }
 0x455   : > { %v1460_v63 = vpop.eup %1459 }
 0x456   : > { %v691_v4 = vmul.f32 %v1460_v63, %v632_v3 }
 0x4b6   : > { %v694_v0 = vpop.permute.xlu1 %693 }
 0x4b7   : > { %v696_v1 = vmul.f32 %v1460_v63, %v694_v0 }
 0x4b9   : > { %698 = vrot.lane.b32.xlu0 %v696_v1, %s1722_s0 }
 0x4c3   : > { %v2134_v10 = vpop.permute.xlu1 %713 }
 0x4c4   : > { %vm715_vm6 = vcmp.eq.s32.totalorder %v2134_v10, 1 }
 0x52b   : > { %v699_v6 = vpop.permute.xlu0 %698 }
 0x52c   : > { %v701_v8 = vadd.f32 %v699_v6, %v691_v4 }
 0x52e   : > { %1461 = vtanh.f32 %v701_v8  ;;  %v2162_v29 = vsel %vm715_vm6, %v701_v8, %v632_v3 }
 0x53b   : > { %v1462_v9 = vpop.eup %1461 }
 0x53c   : > { %704 = vrot.lane.b32.xlu0 %v1462_v9, %s1722_s0 }
 0x5ae   : > { %v705_v11 = vpop.permute.xlu0 %704 }
 0x5af   : > { %v2136_v12 = vmul.f32 %v1460_v63, %v705_v11 }
 0x5b1   : > { %v738_v13 = vsel %vm715_vm6, %v2136_v12, %v631_v48 }
 0x5b2   : > { %v743_v14 = vpack.c.bf16 %v738_v13, %v738_v13 }
 0x5b4   : > { %747 = vrot.lane.b32.xlu1 %v743_v14, %s1723_s21 }
 0x626   : > { %v748_v15 = vpop.permute.xlu1 %747 }
 0x627   : > { %1276 = vmatmul.mubr.msk.bf16.vlgmr.msra.gmra.mxu1 %vm524_vm2, %v748_v15 }
 0x628   : > { %1280 = vmatpush3.bf16.msra.mxu1 %v2047_v5  ;;  %1283 = vmatprep.mubr.msk.bf16.mxu1 %vm1720_vm1, %v1719_v2 }
 0x629   : > { %1281 = vmatprep.subr.bf16.mxu1 %v1719_v2 }
 0x62c   : > { %1282 = vmatpush3.bf16.msra.mxu1 %v2051_v7  ;;  %v819_v7 = vsel %vm818_vm7, 1, %v1721_v27 }
 0x6e7   : > { %v786_v17 = vpop.f32.mrf.mxu1 }
 0x6e8   : > { %v787_v18 = vadd.f32 %v786_v17, %v745_v16  ;;  %v716_v16 = vsel %vm715_vm6, %v2136_v12, 0.0 }
 0x6e9   : > { %v1277_v19 = vpop.f32.mrf.mxu1  ;;  %v717_v17 = vpack.c.bf16 %v716_v16, %v716_v16 }
 0x6ea   : > { %1463 = vtanh.f32 %v787_v18  ;;  %v1201_v22 = vmul.f32 -1.442695, %v787_v18 }
 0x6eb   : > { %v789_v5 = vpop.f32.mrf.mxu1  ;;  %v725_v18 = vrot.slane %v717_v17, %v612_v56 }
 0x6ec   : > { %1465 = vpow2.f32 %v1201_v22 }
 0x6ed   : > { %v1278_v20 = vpop.f32.mrf.mxu1  ;;  %v732_v5 = vrot.slane %v725_v18, %v612_v56 }
 0x6f7   : > { %v1464_v2 = vpop.eup %1463 }
 0x6f8   : > { %801 = vrot.lane.b32.xlu0 %v1464_v2, %s1722_s0 }
 0x6f9   : > { %v1466_v23 = vpop.eup %1465 }
 0x6fa   : > { %v795_v24 = vadd.f32 1.0, %v1466_v23 }
 0x6fc   : > { %821 = vperm.xlu0 %1436, %v819_v7   ;;  %1467 = vrcp.f32 %v795_v24 }
 0x709   : > { %v1468_v25 = vpop.eup %1467 }
 0x70a   : > { %v799_v30 = vmul.f32 %v1468_v25, %v2162_v29 }
 0x76a   : > { %v802_v26 = vpop.permute.xlu0 %801 }
 0x76b   : > { %v804_v28 = vmul.f32 %v1468_v25, %v802_v26 }
 0x76d   : > { %806 = vrot.lane.b32.xlu1 %v804_v28, %s1722_s0 }
 0x777   : > { %v822_v35 = vpop.permute.xlu0 %821 }
 0x778   : > { %vm823_vm8 = vcmp.eq.s32.totalorder %v822_v35, 1 }
 0x7df   : > { %v807_v31 = vpop.permute.xlu1 %806 }
 0x7e0   : > { %v809_v32 = vadd.f32 %v807_v31, %v799_v30 }
 0x7e2   : > { %1469 = vtanh.f32 %v809_v32  ;;  %v847_v9 = vsel %vm823_vm8, %v809_v32, %v2162_v29 }
 0x7ef   : > { %v1470_v34 = vpop.eup %1469 }
 0x7f0   : > { %812 = vrot.lane.b32.xlu1 %v1470_v34, %s1722_s0 }
 0x862   : > { %v813_v36 = vpop.permute.xlu1 %812 }
 0x863   : > { %v815_v37 = vmul.f32 %v1468_v25, %v813_v36 }
 0x865   : > { %v2167_v38 = vsel %vm823_vm8, %v815_v37, %v738_v13  ;;  %v824_v59 = vsel %vm823_vm8, %v815_v37, 0.0 }
 0x866   : > { %v851_v39 = vpack.c.bf16 %v2167_v38, %v2167_v38  ;;  %v825_v62 = vpack.c.bf16 %v824_v59, %v824_v59 }
 0x868   : > { %855 = vrot.lane.b32.xlu1 %v851_v39, %s1723_s21  ;;  %v833_v63 = vrot.slane %v825_v62, %v612_v56 }
 0x86a   : > { %v840_v47 = vrot.slane %v833_v63, %v612_v56 }
 0x8da   : > { %v856_v40 = vpop.permute.xlu1 %855 }
 0x8db   : > { %1284 = vmatmul.mubr.msk.bf16.vlgmr.msra.gmra.mxu1 %vm524_vm2, %v856_v40 }
 0x99b   : > { %v894_v42 = vpop.f32.mrf.mxu1 }
 0x99c   : > { %v895_v43 = vadd.f32 %v894_v42, %v853_v41 }
 0x99d   : > { %v1285_v45 = vpop.f32.mrf.mxu1 }
 0x99e   : > { %1471 = vtanh.f32 %v895_v43  ;;  %v1204_v33 = vmul.f32 -1.442695, %v895_v43 }
 0x99f   : > { %v897_v46 = vpop.f32.mrf.mxu1 }
 0x9a0   : > { %1473 = vpow2.f32 %v1204_v33 }
 0x9a1   : > { %v1286_v48 = vpop.f32.mrf.mxu1 }
 0x9ab   : > { %v1472_v58 = vpop.eup %1471 }
 0x9ac   : > { %909 = vrot.lane.b32.xlu0 %v1472_v58, %s1722_s0 }
 0x9ad   : > { %v1474_v0 = vpop.eup %1473 }
 0x9ae   : > { %v903_v1 = vadd.f32 1.0, %v1474_v0 }
 0x9b0   : > { %929 = vperm.xlu0 %1436, %v927_v60   ;;  %1475 = vrcp.f32 %v903_v1 }
 0x9b4   : > { %621 = vrot.lane.b32.xlu0 %v620_v44, %s1723_s21 }
 0x9b8   : > { %841 = vrot.lane.b32.xlu0 %v840_v47, %s1723_s21 }
 0x9bd   : > { %v1476_v3 = vpop.eup %1475 }
 0x9be   : > { %v907_v11 = vmul.f32 %v1476_v3, %v847_v9 }
 0xa1e   : > { %v910_v4 = vpop.permute.xlu0 %909 }
 0xa1f   : > { %v912_v27 = vmul.f32 %v1476_v3, %v910_v4 }
 0xa21   : > { %914 = vrot.lane.b32.xlu1 %v912_v27, %s1722_s0 }
 0xa2b   : > { %v930_v6 = vpop.permute.xlu0 %929 }
 0xa2c   : > { %vm931_vm11 = vcmp.eq.s32.totalorder %v930_v6, 1 }
 0xa2f   : > { %v622_v8 = vpop.permute.xlu0 %621 }
 0xa30   : > { %626 = vst.msk [vmem:[%s624_s4] sm:$0x1] %vm625_vm10, %v622_v8 }
 0xa33   : > { %v842_v12 = vpop.permute.xlu0 %841 }
 0xa93   : > { %v915_v13 = vpop.permute.xlu1 %914 }
 0xa94   : > { %v917_v14 = vadd.f32 %v915_v13, %v907_v11 }
 0xa96   : > { %1477 = vtanh.f32 %v917_v14  ;;  %v955_v15 = vsel %vm931_vm11, %v917_v14, %v847_v9 }
 0xaa3   : > { %v1478_v19 = vpop.eup %1477 }
 0xaa4   : > { %920 = vrot.lane.b32.xlu1 %v1478_v19, %s1722_s0  ;;  %s1725_s0 = smov 96  }
 0xaa8   : > { %733 = vrot.lane.b32.xlu1 %v732_v5, %s1723_s21 }
 0xb16   : > { %v921_v20 = vpop.permute.xlu1 %920 }
 0xb17   : > { %v923_v21 = vmul.f32 %v1476_v3, %v921_v20 }
 0xb19   : > { %v932_v2 = vsel %vm931_vm11, %v923_v21, 0.0  ;;  %v954_v7 = vsel %vm931_vm11, %v923_v21, %v2167_v38 }
 0xb1a   : > { %v933_v22 = vpack.c.bf16 %v932_v2, %v932_v2  ;;  %v734_v10 = vpop.permute.xlu1 %733  ;;  %957 = vrot.lane.b32.xlu0 %v954_v7, %s1723_s21 }
 0xb1b   : > { %737 = vst.msk [vmem:[%s736_s29] sm:$0x1] %vm625_vm10, %v734_v10 }
 0xb1c   : > { %v941_v23 = vrot.slane %v933_v22, %v612_v56  ;;  %845 = vst.msk [vmem:[%s844_s26] sm:$0x1] %vm625_vm10, %v842_v12 }
 0xb1e   : > { %v948_v24 = vrot.slane %v941_v23, %v612_v56 }
 0xb20   : > { %949 = vrot.lane.b32.xlu1 %v948_v24, %s1723_s21  ;;  %s1567_s21 = sshll.u32 %s1726_s12, 4  ;;  %s1568_s21 = int_to_ptr.vmem [resolvable:$false] %s1567_s21 }
 0xb21   : > { %s1569_s7 = scalar_lea.vmem %s1568_s21, 128  ;;  %p1570_p12 = scmp.lt.s32.totalorder %s2220_s17, %s1568_s21 }
 0xb22   : > { %p1571_p7 = scmp.lt.s32.totalorder %s1569_s7, %s1563_s14 }
 0xb24   : > { %963 = vrot.lane.b32.xlu1 %v955_v15, %s1725_s0  ;;  %p1572_p5 = por %p1571_p7, %p1570_p12 }
 0xb26   : > { %p1573_p0 = pnand %p1572_p5, %p1566_p10 }
 0xb8c   : > { %v958_v25 = vpop.permute.xlu0 %957 }
 0xb8d   : > { %961 = vst.msk [vmem:[#allocation2] sm:$0x3] %vm960_vm12, %v958_v25 }
 0xb92   : > { %v950_v26 = vpop.permute.xlu1 %949 }
 0xb93   : > { %953 = vst.msk [vmem:[%s952_s23] sm:$0x1] %vm625_vm10, %v950_v26 }
 0xb94   : > { %1576 = shalt.err (!%p1573_p0)
}
 0xb95   : > { %s1577_s9 = scalar_lea.hbm %s2218_s2, 64  ;;  %s1581_s4 = scalar_lea.hbm %s2370_s8, 256 }
 0xb96   : > { %p1578_p11 = scmp.ne.s32.totalorder %s2218_s2, %s1577_s9  ;;  %p1582_p1 = scmp.lt.s32.totalorder %s2218_s2, %s2370_s8 }
 0xb97   : > { %p1583_p9 = scmp.lt.s32.totalorder %s1581_s4, %s1577_s9 }
 0xb98   : > { %p1579_p8 = pnand %p1578_p11, %p2371_p6 }
 0xb99   : > { %p1584_p2 = por %p1583_p9, %p1582_p1 }
 0xb9a   : > { %p1580_p13 = pneg %p1579_p8 }
 0xb9c   : > { %p1585_p4 = pnand %p1584_p2, %p1580_p13 }
 0xb9e   : > { %1588 = shalt.err (!%p1585_p4)
}
 0xb9f   : > { %s1727_s0 = smov 16   ;;  %s1728_s10 = smov 1   ;;  %v964_v28 = vpop.permute.xlu1 %963 }
 0xba0   : > { %1293 = dma.vmem_to_hbm [thread:$0]  (%p2371_p6), %s2220_s17, 64, %s2218_s2, %s2225_s5, %s1727_s0, %s1727_s0, %s1728_s10   ;;  %966 = vst.msk [vmem:[#allocation3] sm:$0x3] %vm960_vm12, %v964_v28 }
 0xba1 PF: > { %p1310_p3 = scmp.ge.s32.totalorder %s1711_s6, 2  ;;  %s1002_s16 = sand.u32 1, %s1659_s18  }
 0xba2   : > { %p2372_p10 = scmp.ne.s32.totalorder %s2352_s27, 0  ;;  %s1003_s28 = scalar_lea.sflag [#allocation7], %s1002_s16 }
 0xba4   : > { %p1306_p12 = pnand %p1310_p3, %p2372_p10 }
 0xba6   : > { %p1307_p7 = pneg %p1306_p12 }
 0xba8   : > { %1654 = dma.done.wait (%p1307_p7), %s1003_s28, 64  }
 0xba9   : > { %1656 = vsyncadd (%p1307_p7), %s1003_s28, 4294967232  ;;  %s24_s6 = sadd.s32 1, %s1711_s6   ;;  %s2374_s17 = sld [smem:[#allocation26_spill]] }
 0xbaa   : > { %p2254_p5 = scmp.ge.s32.totalorder %s24_s6, 6   ;;  %s2375_s23 = sld [smem:[#allocation15_spill]] }
 0xbab   : > { %s2376_s15 = sld [smem:[#allocation24_spill]]  ;;  %s2384_s18 = smov %s1663_s19 }
 0xbac   : > { %s2377_s13 = sld [smem:[#allocation16_spill]]  ;;  %s2385_s19 = smov %s1667_s20 }
 0xbad   : > { %s2378_s25 = sld [smem:[#allocation17_spill]]  ;;  %s2387_s21 = smov %s1675_s22 }
 0xbae   : > { %s2379_s26 = sld [smem:[#allocation25_spill]]  ;;  %s2391_s28 = smov %s1707_s30 }
 0xbaf   : > { %s2380_s27 = sld [smem:[#allocation20_spill]]  ;;  %s2386_s20 = smov %s2374_s17 }
 0xbb0   : > { %s2381_s29 = sld [smem:[#allocation21_spill]]  ;;  %s2388_s22 = smov %s2375_s23 }
 0xbb1   : > { %s2382_s2 = sld [smem:[#allocation22_spill]]  ;;  %s2389_s23 = smov %s2376_s15 }
 0xbb2   : > { %s2390_s24 = smov %s2377_s13 }
 0xbb3   :  { %23 = sbr.rel (!%p2254_p5) target bundleno = 17 (0x11), region = 124 }
 0xbb7   : > { %s2392_s30 = smov %s2382_s2 }
 0xbb8   :  { %1008 = vsyncpa [#allocation6], 1 }
 0xbb9   :  { %1010 = vsyncpa [#allocation6 + $0x1], 1 }
 0xbba   :  { %1011 = vsyncpa [#allocation9], 1 }
 0xbbb   :  { %1013 = vsyncpa [#allocation9 + $0x1], 1 }
 0xbbc   :  { %1014 = vsyncpa [#allocation7], 1 }
 0xbbd   :  { %1016 = vsyncpa [#allocation7 + $0x1], 1 }

</bundles_post_ra>
